<compile_context>
chip_gen: v7x
topology: tpu7x:2x2x1
jax: 0.10.0
libtpu: 0.0.40
codegen_flags: <defaults>
</compile_context>

<pallas_src>
import functools

import jax
import jax.numpy as jnp
from jax.experimental import pallas as pl
from jax.experimental.pallas import tpu as pltpu


def _round_up(x, m):
    return (x + m - 1) // m * m


def _pick_row_tile(h):
    # Prefer ~8 output rows per grid step (keeps the accumulator small and
    # gives enough grid steps for pipelining); must divide H exactly.
    for cand in (8, 16, 4, 2, 1):
        if h % cand == 0:
            return cand
    return 1


# ----------------------------------------------------------------------------
# 3x3 conv (stride 1, pad 1) + bias + ReLU.
# Grid = (batch, row_blocks). The full (H+2, W+2, C) padded plane is the input
# block (DMA'd once per batch, reused across row blocks); each step packs the
# 9 shifted taps of its row slab into a (th*W, 9*C) bf16 scratch and does a
# single MXU matmul with f32 accumulation.
# ----------------------------------------------------------------------------
def _conv3x3_relu_kernel(x_ref, w_ref, b_ref, o_ref, lhs_ref, *, th):
    # x_ref:   (H+2, W+2, C)   bf16 (padded plane for this batch element)
    # w_ref:   (9*C, C)        bf16 (taps packed along the contraction dim)
    # b_ref:   (1, C)          f32
    # o_ref:   (th, W, C)      bf16 (output row block)
    # lhs_ref: (th*W, 9*C)     bf16 VMEM scratch (im2col slab)
    w_out = o_ref.shape[1]
    c = o_ref.shape[2]

    r = pl.program_id(1)
    row0 = pl.multiple_of(r * th, th)
    xs = x_ref[pl.ds(row0, th + 2), :, :]          # (th+2, W+2, C) bf16

    for dy in range(3):
        for dx in range(3):
            tap = dy * 3 + dx
            lhs_ref[:, tap * c:(tap + 1) * c] = (
                xs[dy:dy + th, dx:dx + w_out, :].reshape(th * w_out, c))

    acc = jnp.dot(lhs_ref[...], w_ref[...], preferred_element_type=jnp.float32)
    acc = jnp.maximum(acc + b_ref[...], 0.0)
    o_ref[...] = acc.reshape(th, w_out, c).astype(o_ref.dtype)


def conv3x3_relu(x, w_packed, b):
    """x: (N, H, W, C) bf16 with C % 128 == 0; w_packed: (9*C, C) bf16; b: (C,) f32."""
    n, h, w, c = x.shape
    assert w_packed.shape == (9 * c, c) and c % 128 == 0
    th = _pick_row_tile(h)
    xp = jnp.pad(x, ((0, 0), (1, 1), (1, 1), (0, 0)))  # SAME padding
    grid = (n, h // th)
    kernel = functools.partial(_conv3x3_relu_kernel, th=th)
    return pl.pallas_call(
        kernel,
        out_shape=jax.ShapeDtypeStruct((n, h, w, c), jnp.bfloat16),
        grid_spec=pltpu.PrefetchScalarGridSpec(
            num_scalar_prefetch=0,
            grid=grid,
            in_specs=[
                pl.BlockSpec((None, h + 2, w + 2, c),
                             lambda ni, ri: (ni, 0, 0, 0)),
                pl.BlockSpec((9 * c, c), lambda ni, ri: (0, 0)),
                pl.BlockSpec((1, c), lambda ni, ri: (0, 0)),
            ],
            out_specs=pl.BlockSpec((None, th, w, c),
                                   lambda ni, ri: (ni, ri, 0, 0)),
            scratch_shapes=[pltpu.VMEM((th * w, 9 * c), jnp.bfloat16)],
        ),
        compiler_params=pltpu.CompilerParams(
            dimension_semantics=("parallel", "arbitrary")),
        cost_estimate=pl.CostEstimate(
            flops=2 * n * h * w * 9 * c * c,
            transcendentals=0,
            bytes_accessed=2 * (xp.size + n * h * w * c + w_packed.size)
                           + 4 * b.size),
    )(xp, w_packed, b.reshape(1, c))


# ----------------------------------------------------------------------------
# Fused heads: both branch 1x1-conv stacks in one row-tiled kernel.
#   mid = relu(x @ W1 + b1)          W1 = [Wh1 | Wp1]  -> (C, 1024)
#   out = mid @ W2 + b2              W2 block-diagonal -> (1024, CP), CP = 128k
# Heatmaps live in out[:, :n_hm], PAFs in out[:, n_hm:n_hm+n_paf]; the rest of
# the 128-wide slab is zero-padding that keeps stores lane-dense.
# ----------------------------------------------------------------------------
def _heads_kernel(x_ref, w1_ref, b1_ref, w2_ref, b2_ref, o_ref):
    mid = jnp.dot(x_ref[...], w1_ref[...], preferred_element_type=jnp.float32)
    mid = jnp.maximum(mid + b1_ref[...], 0.0)
    out = jnp.dot(mid.astype(jnp.bfloat16), w2_ref[...],
                  preferred_element_type=jnp.float32)
    o_ref[...] = (out + b2_ref[...]).astype(o_ref.dtype)


def fused_heads(t, heads):
    """t: (N, H, W, C) bf16 -> (N*H*W, CP) f32 lane-dense slab."""
    w1, b1, w2, b2 = heads["w1"], heads["b1"], heads["w2"], heads["b2"]
    n, h, w, c = t.shape
    mid_dim = w1.shape[1]        # 1024
    cp = w2.shape[1]             # multiple of 128
    m = n * h * w
    tm = 512 if m >= 2048 else 256
    m_pad = _round_up(m, tm)
    x2 = t.reshape(m, c)
    if m_pad > m:
        x2 = jnp.pad(x2, ((0, m_pad - m), (0, 0)))
    out = pl.pallas_call(
        _heads_kernel,
        out_shape=jax.ShapeDtypeStruct((m_pad, cp), jnp.float32),
        grid_spec=pltpu.PrefetchScalarGridSpec(
            num_scalar_prefetch=0,
            grid=(m_pad // tm,),
            in_specs=[
                pl.BlockSpec((tm, c), lambda i: (i, 0)),
                pl.BlockSpec((c, mid_dim), lambda i: (0, 0)),
                pl.BlockSpec((1, mid_dim), lambda i: (0, 0)),
                pl.BlockSpec((mid_dim, cp), lambda i: (0, 0)),
                pl.BlockSpec((1, cp), lambda i: (0, 0)),
            ],
            out_specs=pl.BlockSpec((tm, cp), lambda i: (i, 0)),
        ),
        compiler_params=pltpu.CompilerParams(
            dimension_semantics=("parallel",)),
        cost_estimate=pl.CostEstimate(
            flops=2 * m_pad * c * mid_dim + 2 * m_pad * mid_dim * cp,
            transcendentals=0,
            bytes_accessed=2 * (x2.size + w1.size + w2.size)
                           + 4 * (m_pad * cp + b1.size + b2.size)),
    )(x2, w1, b1.reshape(1, mid_dim), w2, b2.reshape(1, cp))
    return out[:m]


# ----------------------------------------------------------------------------
# Parameter construction (deterministic, synthetic), stored directly in the
# kernel-friendly packed layouts.  PyTorch's (Cout, Cin, kH, kW) weights would
# simply be transposed / zero-padded into these shapes.
# ----------------------------------------------------------------------------
def init_initial_stage_params(key, num_channels, num_heatmaps, num_pafs):
    c = num_channels
    c_pad = _round_up(c, 128)                    # lane-dense channel dim
    hid = 512
    cp = _round_up(num_heatmaps + num_pafs, 128)  # lane-dense head output slab
    keys = jax.random.split(key, 14)
    kit = iter(keys)

    def uniform(shape, fan_in):
        s = 1.0 / float(fan_in) ** 0.5
        return jax.random.uniform(next(kit), shape, jnp.float32, -s, s)

    trunk = []
    for _ in range(3):
        wt = uniform((3, 3, c, c), 9 * c)
        bt = uniform((c,), 9 * c)
        wp = jnp.zeros((3, 3, c_pad, c_pad), jnp.float32).at[:, :, :c, :c].set(wt)
        bp = jnp.zeros((c_pad,), jnp.float32).at[:c].set(bt)
        # pack taps along the contraction dim: (3,3,C,C) -> (9*C, C)
        trunk.append((wp.reshape(9 * c_pad, c_pad).astype(jnp.bfloat16), bp))

    wh1 = uniform((c, hid), c)
    bh1 = uniform((hid,), c)
    wp1 = uniform((c, hid), c)
    bp1 = uniform((hid,), c)
    wh2 = uniform((hid, num_heatmaps), hid)
    bh2 = uniform((num_heatmaps,), hid)
    wpf2 = uniform((hid, num_pafs), hid)
    bpf2 = uniform((num_pafs,), hid)

    # Fused first 1x1 convs of both branches: (C_pad, 1024)
    w1 = jnp.zeros((c_pad, 2 * hid), jnp.float32)
    w1 = w1.at[:c, :hid].set(wh1).at[:c, hid:].set(wp1)
    b1 = jnp.concatenate([bh1, bp1])

    # Block-diagonal fused final projections: (1024, CP)
    w2 = jnp.zeros((2 * hid, cp), jnp.float32)
    w2 = w2.at[:hid, :num_heatmaps].set(wh2)
    w2 = w2.at[hid:, num_heatmaps:num_heatmaps + num_pafs].set(wpf2)
    b2 = jnp.zeros((cp,), jnp.float32)
    b2 = b2.at[:num_heatmaps].set(bh2)
    b2 = b2.at[num_heatmaps:num_heatmaps + num_pafs].set(bpf2)

    return {
        "c_pad": c_pad,
        "num_heatmaps": num_heatmaps,
        "num_pafs": num_pafs,
        "trunk": trunk,
        "heads": {"w1": w1.astype(jnp.bfloat16), "b1": b1,
                  "w2": w2.astype(jnp.bfloat16), "b2": b2},
    }


def initial_stage_forward(x_nchw, params):
    """x_nchw: (N, C, H, W) f32 -> [heatmaps (N, n_hm, H, W), pafs (N, n_paf, H, W)]."""
    n, c_in, h, w = x_nchw.shape
    c_pad = params["c_pad"]
    n_hm = params["num_heatmaps"]
    n_paf = params["num_pafs"]

    # NCHW -> NHWC, bf16 activations, channels padded to a multiple of 128.
    x = jnp.transpose(x_nchw, (0, 2, 3, 1)).astype(jnp.bfloat16)
    if c_pad > c_in:
        x = jnp.pad(x, ((0, 0), (0, 0), (0, 0), (0, c_pad - c_in)))

    t = x
    for wt, bt in params["trunk"]:
        t = conv3x3_relu(t, wt, bt)

    out = fused_heads(t, params["heads"])           # (N*H*W, CP) f32
    hm = out[:, :n_hm].reshape(n, h, w, n_hm)
    pf = out[:, n_hm:n_hm + n_paf].reshape(n, h, w, n_paf)

    # back to NCHW to match the PyTorch module's output convention
    return [jnp.transpose(hm, (0, 3, 1, 2)), jnp.transpose(pf, (0, 3, 1, 2))]


if __name__ == "__main__":
    num_channels, num_heatmaps, num_pafs = 32, 8, 16
    N, H, W = 2, 16, 16

    key = jax.random.PRNGKey(0)
    k_x, k_p = jax.random.split(key)
    x = jax.random.normal(k_x, (N, num_channels, H, W), jnp.float32)
    params = init_initial_stage_params(k_p, num_channels, num_heatmaps, num_pafs)

    heatmaps, pafs = initial_stage_forward(x, params)
    jax.block_until_ready(heatmaps)
    jax.block_until_ready(pafs)

    assert heatmaps.shape == (N, num_heatmaps, H, W), heatmaps.shape
    assert pafs.shape == (N, num_pafs, H, W), pafs.shape
    print("KERNEL_OK")
</pallas_src>

<mosaic_0001>
module attributes {stable_mosaic.version = 11 : i64} {
  func.func @_conv3x3_relu_kernel(%arg0: i32, %arg1: i32, %arg2: memref<1x18x18x128xbf16, #tpu.memory_space<vmem>>, %arg3: memref<1152x128xbf16, #tpu.memory_space<vmem>>, %arg4: memref<1x128xf32, #tpu.memory_space<vmem>>, %arg5: memref<1x8x16x128xbf16, #tpu.memory_space<vmem>>, %arg6: memref<128x1152xbf16, #tpu.memory_space<vmem>>) attributes {dimension_semantics = [#tpu.dimension_semantics<parallel>, #tpu.dimension_semantics<arbitrary>], iteration_bounds = array<i64: 2, 2>, scalar_prefetch = 0 : i64, scratch_operands = 1 : i64, tpu.core_type = #tpu.core_type<tc>, window_params = [{transform_indices = @transform_0, window_bounds = array<i64: 1, 18, 18, 128>}, {pipeline_mode = #tpu.pipeline_mode<synchronous>, transform_indices = @transform_1, window_bounds = array<i64: 1152, 128>}, {pipeline_mode = #tpu.pipeline_mode<synchronous>, transform_indices = @transform_2, window_bounds = array<i64: 1, 128>}, {transform_indices = @transform_3, window_bounds = array<i64: 1, 8, 16, 128>}]} {
    %c8_i32 = arith.constant 8 : i32
    %0 = arith.muli %arg1, %c8_i32 : i32
    %1 = tpu.assume_multiple %0, 8 : i32
    %c0 = arith.constant 0 : index
    %2 = arith.index_cast %1 : i32 to index
    %c0_0 = arith.constant 0 : index
    %c0_1 = arith.constant 0 : index
    %3 = vector.load %arg2[%c0, %2, %c0_0, %c0_1] : memref<1x18x18x128xbf16, #tpu.memory_space<vmem>>, vector<1x10x18x128xbf16>
    %4 = vector.shape_cast %3 : vector<1x10x18x128xbf16> to vector<10x18x128xbf16>
    %5 = vector.extract_strided_slice %4 {offsets = [0, 0, 0], sizes = [8, 16, 128], strides = [1, 1, 1]} : vector<10x18x128xbf16> to vector<8x16x128xbf16>
    %6 = vector.shape_cast %5 : vector<8x16x128xbf16> to vector<128x128xbf16>
    %c0_2 = arith.constant 0 : index
    %c0_3 = arith.constant 0 : index
    %7 = vector.load %arg6[%c0_2, %c0_3] : memref<128x1152xbf16, #tpu.memory_space<vmem>>, vector<128x128xbf16>
    tpu.vector_store %arg6[%c0_2, %c0_3], %6 {strides = array<i32>} : memref<128x1152xbf16, #tpu.memory_space<vmem>>, vector<128x128xbf16>,
    %8 = vector.extract_strided_slice %4 {offsets = [0, 1, 0], sizes = [8, 16, 128], strides = [1, 1, 1]} : vector<10x18x128xbf16> to vector<8x16x128xbf16>
    %9 = vector.shape_cast %8 : vector<8x16x128xbf16> to vector<128x128xbf16>
    %c0_4 = arith.constant 0 : index
    %c128 = arith.constant 128 : index
    %10 = vector.load %arg6[%c0_4, %c128] : memref<128x1152xbf16, #tpu.memory_space<vmem>>, vector<128x128xbf16>
    tpu.vector_store %arg6[%c0_4, %c128], %9 {strides = array<i32>} : memref<128x1152xbf16, #tpu.memory_space<vmem>>, vector<128x128xbf16>,
    %11 = vector.extract_strided_slice %4 {offsets = [0, 2, 0], sizes = [8, 16, 128], strides = [1, 1, 1]} : vector<10x18x128xbf16> to vector<8x16x128xbf16>
    %12 = vector.shape_cast %11 : vector<8x16x128xbf16> to vector<128x128xbf16>
    %c0_5 = arith.constant 0 : index
    %c256 = arith.constant 256 : index
    %13 = vector.load %arg6[%c0_5, %c256] : memref<128x1152xbf16, #tpu.memory_space<vmem>>, vector<128x128xbf16>
    tpu.vector_store %arg6[%c0_5, %c256], %12 {strides = array<i32>} : memref<128x1152xbf16, #tpu.memory_space<vmem>>, vector<128x128xbf16>,
    %14 = vector.extract_strided_slice %4 {offsets = [1, 0, 0], sizes = [8, 16, 128], strides = [1, 1, 1]} : vector<10x18x128xbf16> to vector<8x16x128xbf16>
    %15 = vector.shape_cast %14 : vector<8x16x128xbf16> to vector<128x128xbf16>
    %c0_6 = arith.constant 0 : index
    %c384 = arith.constant 384 : index
    %16 = vector.load %arg6[%c0_6, %c384] : memref<128x1152xbf16, #tpu.memory_space<vmem>>, vector<128x128xbf16>
    tpu.vector_store %arg6[%c0_6, %c384], %15 {strides = array<i32>} : memref<128x1152xbf16, #tpu.memory_space<vmem>>, vector<128x128xbf16>,
    %17 = vector.extract_strided_slice %4 {offsets = [1, 1, 0], sizes = [8, 16, 128], strides = [1, 1, 1]} : vector<10x18x128xbf16> to vector<8x16x128xbf16>
    %18 = vector.shape_cast %17 : vector<8x16x128xbf16> to vector<128x128xbf16>
    %c0_7 = arith.constant 0 : index
    %c512 = arith.constant 512 : index
    %19 = vector.load %arg6[%c0_7, %c512] : memref<128x1152xbf16, #tpu.memory_space<vmem>>, vector<128x128xbf16>
    tpu.vector_store %arg6[%c0_7, %c512], %18 {strides = array<i32>} : memref<128x1152xbf16, #tpu.memory_space<vmem>>, vector<128x128xbf16>,
    %20 = vector.extract_strided_slice %4 {offsets = [1, 2, 0], sizes = [8, 16, 128], strides = [1, 1, 1]} : vector<10x18x128xbf16> to vector<8x16x128xbf16>
    %21 = vector.shape_cast %20 : vector<8x16x128xbf16> to vector<128x128xbf16>
    %c0_8 = arith.constant 0 : index
    %c640 = arith.constant 640 : index
    %22 = vector.load %arg6[%c0_8, %c640] : memref<128x1152xbf16, #tpu.memory_space<vmem>>, vector<128x128xbf16>
    tpu.vector_store %arg6[%c0_8, %c640], %21 {strides = array<i32>} : memref<128x1152xbf16, #tpu.memory_space<vmem>>, vector<128x128xbf16>,
    %23 = vector.extract_strided_slice %4 {offsets = [2, 0, 0], sizes = [8, 16, 128], strides = [1, 1, 1]} : vector<10x18x128xbf16> to vector<8x16x128xbf16>
    %24 = vector.shape_cast %23 : vector<8x16x128xbf16> to vector<128x128xbf16>
    %c0_9 = arith.constant 0 : index
    %c768 = arith.constant 768 : index
    %25 = vector.load %arg6[%c0_9, %c768] : memref<128x1152xbf16, #tpu.memory_space<vmem>>, vector<128x128xbf16>
    tpu.vector_store %arg6[%c0_9, %c768], %24 {strides = array<i32>} : memref<128x1152xbf16, #tpu.memory_space<vmem>>, vector<128x128xbf16>,
    %26 = vector.extract_strided_slice %4 {offsets = [2, 1, 0], sizes = [8, 16, 128], strides = [1, 1, 1]} : vector<10x18x128xbf16> to vector<8x16x128xbf16>
    %27 = vector.shape_cast %26 : vector<8x16x128xbf16> to vector<128x128xbf16>
    %c0_10 = arith.constant 0 : index
    %c896 = arith.constant 896 : index
    %28 = vector.load %arg6[%c0_10, %c896] : memref<128x1152xbf16, #tpu.memory_space<vmem>>, vector<128x128xbf16>
    tpu.vector_store %arg6[%c0_10, %c896], %27 {strides = array<i32>} : memref<128x1152xbf16, #tpu.memory_space<vmem>>, vector<128x128xbf16>,
    %29 = vector.extract_strided_slice %4 {offsets = [2, 2, 0], sizes = [8, 16, 128], strides = [1, 1, 1]} : vector<10x18x128xbf16> to vector<8x16x128xbf16>
    %30 = vector.shape_cast %29 : vector<8x16x128xbf16> to vector<128x128xbf16>
    %c0_11 = arith.constant 0 : index
    %c1024 = arith.constant 1024 : index
    %31 = vector.load %arg6[%c0_11, %c1024] : memref<128x1152xbf16, #tpu.memory_space<vmem>>, vector<128x128xbf16>
    tpu.vector_store %arg6[%c0_11, %c1024], %30 {strides = array<i32>} : memref<128x1152xbf16, #tpu.memory_space<vmem>>, vector<128x128xbf16>,
    %c0_12 = arith.constant 0 : index
    %c0_13 = arith.constant 0 : index
    %32 = vector.load %arg6[%c0_12, %c0_13] : memref<128x1152xbf16, #tpu.memory_space<vmem>>, vector<128x1152xbf16>
    %c0_14 = arith.constant 0 : index
    %c0_15 = arith.constant 0 : index
    %33 = vector.load %arg3[%c0_14, %c0_15] : memref<1152x128xbf16, #tpu.memory_space<vmem>>, vector<1152x128xbf16>
    %cst = arith.constant dense<0.000000e+00> : vector<128x128xf32>
    %34 = tpu.matmul %32, %33, %cst {dimension_numbers = #tpu.dot_dimension_numbers<[1], [0], [0], [1], [0, 0, 1, 1], [], []>} : vector<128x1152xbf16>, vector<1152x128xbf16>, vector<128x128xf32> -> vector<128x128xf32>
    %c0_16 = arith.constant 0 : index
    %c0_17 = arith.constant 0 : index
    %35 = vector.load %arg4[%c0_16, %c0_17] : memref<1x128xf32, #tpu.memory_space<vmem>>, vector<1x128xf32>
    %36 = vector.broadcast %35 : vector<1x128xf32> to vector<128x128xf32>
    %37 = arith.addf %34, %36 : vector<128x128xf32>
    %cst_18 = arith.constant 0.000000e+00 : f32
    %38 = vector.broadcast %cst_18 : f32 to vector<128x128xf32>
    %39 = arith.maximumf %37, %38 : vector<128x128xf32>
    %40 = vector.shape_cast %39 : vector<128x128xf32> to vector<8x16x128xf32>
    %41 = arith.truncf %40 : vector<8x16x128xf32> to vector<8x16x128xbf16>
    %c0_19 = arith.constant 0 : index
    %c0_20 = arith.constant 0 : index
    %c0_21 = arith.constant 0 : index
    %c0_22 = arith.constant 0 : index
    %42 = vector.load %arg5[%c0_19, %c0_20, %c0_21, %c0_22] : memref<1x8x16x128xbf16, #tpu.memory_space<vmem>>, vector<1x8x16x128xbf16>
    %43 = vector.shape_cast %42 : vector<1x8x16x128xbf16> to vector<8x16x128xbf16>
    %44 = vector.shape_cast %41 : vector<8x16x128xbf16> to vector<1x8x16x128xbf16>
    tpu.vector_store %arg5[%c0_19, %c0_20, %c0_21, %c0_22], %44 {strides = array<i32>} : memref<1x8x16x128xbf16, #tpu.memory_space<vmem>>, vector<1x8x16x128xbf16>,
    return
  }
  func.func @transform_0(%arg0: i32, %arg1: i32) -> (i32, i32, i32, i32) {
    %c0_i32 = arith.constant 0 : i32
    %c0_i32_0 = arith.constant 0 : i32
    %c0_i32_1 = arith.constant 0 : i32
    %c0_i32_2 = arith.constant 0 : i32
    return %arg0, %c0_i32, %c0_i32_0, %c0_i32_1 : i32, i32, i32, i32
  }
  func.func @transform_1(%arg0: i32, %arg1: i32) -> (i32, i32) {
    %c0_i32 = arith.constant 0 : i32
    %c0_i32_0 = arith.constant 0 : i32
    %c0_i32_1 = arith.constant 0 : i32
    return %c0_i32, %c0_i32_0 : i32, i32
  }
  func.func @transform_2(%arg0: i32, %arg1: i32) -> (i32, i32) {
    %c0_i32 = arith.constant 0 : i32
    %c0_i32_0 = arith.constant 0 : i32
    %c0_i32_1 = arith.constant 0 : i32
    return %c0_i32, %c0_i32_0 : i32, i32
  }
  func.func @transform_3(%arg0: i32, %arg1: i32) -> (i32, i32, i32, i32) {
    %c0_i32 = arith.constant 0 : i32
    %c0_i32_0 = arith.constant 0 : i32
    %c0_i32_1 = arith.constant 0 : i32
    return %arg0, %arg1, %c0_i32, %c0_i32_0 : i32, i32, i32, i32
  }
}

</mosaic_0001>

<bundles_post_ra>
// kernel: tpu_custom_call.1
= control target key start
LH: loop header
LB: loop body
LE: loop exit
PB: predicated region body
PF: predicated region fallthrough
CT: control target
= control target key end

     0   :  { %8 = vsyncpa [#allocation4], 0  ;;  %s3716_s0 = inlined_call_operand.vmem [shape: bf16[2,18,18,128], index: 0, kind: input, shape index: {}]   ;;  %s3717_s1 = inlined_call_operand.vmem [shape: bf16[1152,128], index: 1, kind: input, shape index: {}]   ;;  %s3718_s2 = inlined_call_operand.vmem [shape: f32[1,128], index: 2, kind: input, shape index: {}]   ;;  %s3719_s3 = inlined_call_operand.hbm [shape: bf16[2,16,16,128], index: 3, kind: output, shape index: {}]  }
   0x1   :  { %10 = vsyncpa [#allocation4 + $0x1], 0  ;;  %s2894_s12 = smov 0   ;;  %s2896_s13 = smov 0  }
   0x2   :  { %s2898_s14 = smov 0   ;;  %s2900_s15 = smov 0  }
   0x3   :  { %s2902_s16 = smov 0   ;;  %s2904_s17 = smov 0  }
   0x4   :  { %s2906_s18 = smov 0   ;;  %s2908_s19 = smov 0  }
   0x5 LB: > { %s2088_s20 = sadd.s32 4294967295, %s2869_s19   ;;  %s2089_s21 = sadd.s32 4294967294, %s2869_s19   ;;  %s2869_s19 = sphi %s2908_s19, %s16_s19   ;;  %s2865_s18 = sphi %s2906_s18, %s3732_s18   ;;  %s2861_s17 = sphi %s2904_s17, %s3731_s17   ;;  %s2857_s16 = sphi %s2902_s16, %s3730_s16   ;;  %s2853_s15 = sphi %s2900_s15, %s3729_s15   ;;  %s2849_s14 = sphi %s2898_s14, %s3728_s14   ;;  %s2845_s13 = sphi %s2896_s13, %s3727_s13   ;;  %s2841_s12 = sphi %s2894_s12, %s3726_s12  }
   0x6   : > { %s25_s22 = sadd.s32 1, %s2861_s17  ;;  %s28_s23 = sadd.s32 1, %s2865_s18 }
   0x7   : > { %p26_p0 = scmp.ge.s32.totalorder %s25_s22, 2  ;;  %p115_p1 = scmp.ne.s32.totalorder %s2849_s14, %s2845_s13 }
   0x8   : > { %p116_p2 = scmp.eq.s32.totalorder %s2088_s20, 3  ;;  %p121_p5 = scmp.ne.s32.totalorder %s2845_s13, %s2841_s12 }
   0x9   : > { %s3734_s22 = smov (%p26_p0, %s25_s22), 0  ;;  %s3736_s23 = smov (!%p26_p0, %s28_s23), %s2865_s18 }
   0xa   : > { %s101_s24 = ssub.s32 %s2861_s17, %s3734_s22  ;;  %p2945_p3 = por %p116_p2, %p115_p1 }
   0xb   : > { %p30_p4 = scmp.ge.s32.totalorder %s3736_s23, 2  ;;  %p122_p6 = scmp.eq.s32.totalorder %s2089_s21, 3 }
   0xc   : > { %p2092_p7 = scmp.ge.s32.totalorder %s2869_s19, 1  ;;  %p154_p9 = scmp.lt.s32.totalorder %s2869_s19, 5 }
   0xd   : > { %s3738_s23 = smov (%p30_p4, %s3736_s23), 0  ;;  %p2954_p8 = por %p122_p6, %p121_p5 }
   0xe   : > { %s100_s27 = ssub.s32 %s2865_s18, %s3738_s23  ;;  %s105_s28 = sadd.s32 1, %s2849_s14 }
   0xf   : > { %s102_s29 = sor.u32 %s101_s24, %s100_s27  ;;  %p155_p10 = pnand %p2092_p7, %p154_p9 }
  0x10   : > { %p103_p11 = scmp.eq.s32.totalorder %s102_s29, 0  ;;  %v2693_v0 = vld [vmem:[%s3717_s1 + $0x40] sm:$0xff] (!%p155_p10)   ;;  %v2697_v4 = vld [vmem:[%s3717_s1 + $0x48] sm:$0xff] (!%p155_p10)   ;;  %v2701_v8 = vld [vmem:[%s3717_s1 + $0x50] sm:$0xff] (!%p155_p10)   ;;  %p178_p12 = scmp.lt.s32.totalorder (!%p155_p10), %s2857_s16, 1  ;;  %vm518_vm0 = vcmask (!%p155_p10), 1042432  }
  0x11   : > { %158 = sbr.rel (%p155_p10) target bundleno = 424 (0x1a8), region = 32  ;;  %v2694_v1 = vld [vmem:[%s3717_s1 + $0xc0] sm:$0xff] (!%p155_p10)   ;;  %2299 = vmatprep.subr.bf16.mxu0 (!%p155_p10), %v2693_v0  ;;  %v2698_v5 = vld [vmem:[%s3717_s1 + $0xc8] sm:$0xff] (!%p155_p10)   ;;  %v2702_v9 = vld [vmem:[%s3717_s1 + $0xd0] sm:$0xff] (!%p155_p10)   ;;  %vm519_vm1 = vcmask (!%p155_p10), 1046532   ;;  %s175_s8 = sand.u32 (!%p155_p10), 1, %s2845_s13  }
  0x12   : > { %s2963_s30 = scalar_select %p103_p11, %s2849_s14, %s105_s28  }
  0x13   : > { %v2695_v2 = vld [vmem:[%s3717_s1] sm:$0xff] (!%p155_p10)   ;;  %2363 = vmatprep.subr.bf16.mxu1 (!%p155_p10), %v2694_v1  ;;  %v2699_v6 = vld [vmem:[%s3717_s1 + $0x8] sm:$0xff] (!%p155_p10)   ;;  %v2703_v10 = vld [vmem:[%s3717_s1 + $0x10] sm:$0xff] (!%p155_p10)   ;;  %s2234_s29 = smul.u32 (!%p155_p10), 96, %s2853_s15  ;;  %vm275_vm2 = vsmask.f32 (!%p155_p10), 3328 }
  0x14   : > { %v2696_v3 = vld [vmem:[%s3717_s1 + $0x80] sm:$0xff] (!%p155_p10)   ;;  %2300 = vmatpush3.bf16.msra.mxu0 (!%p155_p10), %v2695_v2  ;;  %v2700_v7 = vld [vmem:[%s3717_s1 + $0x88] sm:$0xff] (!%p155_p10)   ;;  %v2704_v11 = vld [vmem:[%s3717_s1 + $0x90] sm:$0xff] (!%p155_p10)   ;;  %vm276_vm3 = vsmask.f32 (!%p155_p10), 7440  ;;  %s2093_s10 = sshll.u32 (!%p155_p10), %s175_s8, 6 }
  0x15   : > { %2364 = vmatpush3.bf16.msra.mxu1 (!%p155_p10), %v2696_v3  ;;  %2301 = vmatprep.subr.bf16.mxu0 (!%p155_p10), %v2697_v4  ;;  %v2705_v12 = vld [vmem:[%s3717_s1 + $0x58] sm:$0xff] (!%p155_p10)   ;;  %v2709_v16 = vld [vmem:[%s3717_s1 + $0x60] sm:$0xff] (!%p155_p10)   ;;  %v2713_v20 = vld [vmem:[%s3717_s1 + $0x68] sm:$0xff] (!%p155_p10)   ;;  %s2251_s11 = sshll.u32 (!%p155_p10), %s2853_s15, 4  ;;  %s2230_s20 = sshll.u32 (!%p155_p10), %s2857_s16, 5 }
  0x16   : > { %2365 = vmatprep.subr.bf16.mxu1 (!%p155_p10), %v2698_v5  ;;  %v2706_v13 = vld [vmem:[%s3717_s1 + $0xd8] sm:$0xff] (!%p155_p10)   ;;  %v2710_v17 = vld [vmem:[%s3717_s1 + $0xe0] sm:$0xff] (!%p155_p10)   ;;  %v2714_v21 = vld [vmem:[%s3717_s1 + $0xe8] sm:$0xff] (!%p155_p10)   ;;  %s3638_s21 = scalar_lea.vmem (!%p155_p10), [#allocation3], %s2093_s10  ;;  %s2007_s15 = sadd.s32 (!%p155_p10), %s2251_s11, %s2230_s20 }
  0x17   : > { %v2707_v14 = vld [vmem:[%s3717_s1 + $0x18] sm:$0xff] (!%p155_p10)   ;;  %v2711_v18 = vld [vmem:[%s3717_s1 + $0x20] sm:$0xff] (!%p155_p10)   ;;  %v2715_v22 = vld [vmem:[%s3717_s1 + $0x28] sm:$0xff] (!%p155_p10)   ;;  %s2010_s27 = sshll.u32 (!%p155_p10), %s3638_s21, 4  ;;  %s2871_s6 = smov (!%p155_p10), [#allocation3]   ;;  %s3656_s27 = int_to_ptr.vmem [resolvable:$true] %s2010_s27 }
  0x18   : > { %2302 = vmatpush3.bf16.msra.mxu0 %v2699_v6  ;;  %v2708_v15 = vld [vmem:[%s3717_s1 + $0x98] sm:$0xff]   ;;  %s179_s24 = scalar_select %p178_p12, %s2857_s16, 1  ;;  %v2712_v19 = vld [vmem:[%s3717_s1 + $0xa0] sm:$0xff]   ;;  %v2716_v23 = vld [vmem:[%s3717_s1 + $0xa8] sm:$0xff]  }
  0x19   : > { %2366 = vmatpush3.bf16.msra.mxu1 %v2700_v7  ;;  %2303 = vmatprep.subr.bf16.mxu0 %v2701_v8  ;;  %v2717_v24 = vld [vmem:[%s3717_s1 + $0x70] sm:$0xff]   ;;  %v2721_v28 = vld [vmem:[%s3717_s1 + $0x78] sm:$0xff]   ;;  %v2727_v51 = vld [vmem:[%s3717_s1 + $0x140] sm:$0xff]   ;;  %s2231_s16 = sshll.u32 %s2007_s15, 6 }
  0x1a   : > { %2367 = vmatprep.subr.bf16.mxu1 %v2702_v9  ;;  %s2619_s9 = smul.u32 216, %s179_s24  ;;  %v2718_v25 = vld [vmem:[%s3717_s1 + $0xf0] sm:$0xff]   ;;  %v2722_v29 = vld [vmem:[%s3717_s1 + $0xf8] sm:$0xff]   ;;  %vm3098_vm4 = vmor %vm518_vm0, %vm519_vm1  ;;  %s3654_s5 = scalar_lea.hbm %s3719_s3, %s2231_s16 }
  0x1b   : > { %v2719_v26 = vld [vmem:[%s3717_s1 + $0x30] sm:$0xff]   ;;  %v2723_v30 = vld [vmem:[%s3717_s1 + $0x38] sm:$0xff]   ;;  %v2728_v57 = vld [vmem:[%s3717_s1 + $0x1c0] sm:$0xff]   ;;  %s3664_s24 = scalar_lea.sflag [#allocation4], %s175_s8 }
  0x1c   : > { %2304 = vmatpush3.bf16.msra.mxu0 %v2703_v10  ;;  %s182_s7 = scalar_lea.vmem %s3716_s0, %s2619_s9  ;;  %v2720_v27 = vld [vmem:[%s3717_s1 + $0xb0] sm:$0xff]   ;;  %v2724_v31 = vld [vmem:[%s3717_s1 + $0xb8] sm:$0xff]   ;;  %vm3107_vm5 = vmor %vm275_vm2, %vm276_vm3 }
  0x1d   : > { %2368 = vmatpush3.bf16.msra.mxu1 %v2704_v11  ;;  %2305 = vmatprep.subr.bf16.mxu0 %v2705_v12  ;;  %s3061_s28 = scalar_lea.vmem %s182_s7, %s2234_s29  ;;  %v2729_v6 = vld [vmem:[%s3717_s1 + $0x100] sm:$0xff]   ;;  %s2775_s29 = scalar_lea.vmem %s3656_s27, 1024 }
  0x1e   : > { %2369 = vmatprep.subr.bf16.mxu1 %v2706_v13  ;;  %v3070_v32 = vld [vmem:[%s3061_s28] sm:$0xf]  ;;  %v3073_v33 = vld [vmem:[%s3061_s28 + $0x4] sm:$0xf]  ;;  %v191_v34 = vld [vmem:[%s3061_s28 + $0x8] sm:$0x1]  ;;  %p2776_p13 = scmp.ne.s32.totalorder %s3656_s27, %s2775_s29 }
  0x1f   : > { %v279_v35 = vshrl.u32 %v3070_v32, 16  ;;  %v282_v36 = vshll.u32 %v3070_v32, 16  ;;  %v288_v37 = vshll.u32 %v3073_v33, 16  ;;  %v292_v38 = vshrl.u32 %v3073_v33, 16  ;;  %v3081_v41 = vld [vmem:[%s3061_s28 + $0xc] sm:$0xf] }
  0x20   : > { %2306 = vmatpush3.bf16.msra.mxu0 %v2707_v14  ;;  %v298_v39 = vshll.u32 %v191_v34, 16  ;;  %v526_v40 = vrot.slane %v191_v34, 5  ;;  %v3084_v44 = vld [vmem:[%s3061_s28 + $0x10] sm:$0xf]  ;;  %v303_v45 = vshrl.u32 %v3081_v41, 16  ;;  %v306_v46 = vshll.u32 %v3081_v41, 16  ;;  %p2777_p0 = pnand %p2776_p13, %p2945_p3 }
  0x21   : > { %2370 = vmatpush3.bf16.msra.mxu1 %v2708_v15  ;;  %2307 = vmatprep.subr.bf16.mxu0 %v2709_v16  ;;  %v281_v42 = vrot.slane %v279_v35, 4  ;;  %v284_v43 = vrot.slane %v282_v36, 5  ;;  %v290_v47 = vrot.slane %v288_v37, 5  ;;  %v294_v48 = vrot.slane %v292_v38, 4  ;;  %v2730_v7 = vld [vmem:[%s3717_s1 + $0x180] sm:$0xff]  }
  0x22   : > { %2371 = vmatprep.subr.bf16.mxu1 %v2710_v17  ;;  %v300_v49 = vrot.slane %v298_v39, 5  ;;  %v3090_v50 = vcombine.low %v3081_v41, %v3084_v44  ;;  %v305_v53 = vrot.slane %v303_v45, 4  ;;  %v308_v54 = vrot.slane %v306_v46, 5  ;;  %v194_v8 = vld [vmem:[%s3061_s28 + $0x14] sm:$0x1]  ;;  %p2778_p1 = pneg %p2777_p0 }
  0x23   : > { %v285_v52 = vor.u32 %v284_v43, %v281_v42  ;;  %v312_v55 = vshll.u32 %v3084_v44, 16  ;;  %v295_v59 = vor.u32 %v294_v48, %v290_v47  ;;  %v316_v60 = vshrl.u32 %v3084_v44, 16  ;;  %v3131_v14 = vld [vmem:[%s3061_s28 + $0x18] sm:$0xf]  ;;  %v3134_v15 = vld [vmem:[%s3061_s28 + $0x1c] sm:$0xf] }
  0x24   : > { %2308 = vmatpush3.bf16.msra.mxu0 %v2711_v18  ;;  %1541 = vmatprep.mubr.bf16.mxu1 %v3090_v50  ;;  %v2114_v61 = vrot.slane %v3070_v32, 9  ;;  %v523_v63 = vrot.slane %v3073_v33, 5  ;;  %v309_v0 = vor.u32 %v308_v54, %v305_v53  ;;  %v2098_v11 = vcombine.low %v3070_v32, %v3073_v33  ;;  %v2734_v32 = vld [vmem:[%s3717_s1 + $0x108] sm:$0xff]   ;;  %v197_v38 = vld [vmem:[%s3061_s28 + $0x20] sm:$0x1]  ;;  %v2737_v42 = vld [vmem:[%s3717_s1 + $0x150] sm:$0xff]  }
  0x25   : > { %2372 = vmatpush3.bf16.msra.mxu1 %v2712_v19  ;;  %2309 = vmatprep.subr.bf16.mxu0 %v2713_v20  ;;  %v286_v62 = vrot.slane %v285_v52, 4  ;;  %v296_v1 = vrot.slane %v295_v59, 4  ;;  %v318_v2 = vrot.slane %v316_v60, 4  ;;  %v314_v12 = vrot.slane %v312_v55, 5  ;;  %v2732_v19 = vld [vmem:[%s3717_s1 + $0x148] sm:$0xff]   ;;  %v2738_v54 = vld [vmem:[%s3717_s1 + $0x1d0] sm:$0xff]  }
  0x26   : > { %2373 = vmatprep.subr.bf16.mxu1 %v2714_v21  ;;  %v524_v4 = vsel %vm3098_vm4, %v2114_v61, %v523_v63  ;;  %v525_v5 = vrot.slane %v523_v63, 4  ;;  %v310_v9 = vrot.slane %v309_v0, 4  ;;  %v322_v13 = vshll.u32 %v194_v8, 16  ;;  %v2735_v33 = vld [vmem:[%s3717_s1 + $0x188] sm:$0xff]   ;;  %v3176_v46 = vld [vmem:[%s3061_s28 + $0x24] sm:$0xf] }
  0x27   : > { %v291_v3 = vsel %vm3107_vm5, %v286_v62, %v290_v47  ;;  %v301_v10 = vsel %vm3107_vm5, %v296_v1, %v300_v49  ;;  %v327_v18 = vshrl.u32 %v3131_v14, 16  ;;  %v319_v21 = vor.u32 %v318_v2, %v314_v12  ;;  %v3179_v47 = vld [vmem:[%s3061_s28 + $0x28] sm:$0xf]  ;;  %v2739_v1 = vld [vmem:[%s3717_s1 + $0x110] sm:$0xff]  }
  0x28   : > { %2310 = vmatpush3.bf16.msra.mxu0 %v2715_v22  ;;  %v2106_v16 = vcombine.low %v291_v3, %v301_v10  ;;  %v527_v17 = vsel %vm3098_vm4, %v525_v5, %v526_v40  ;;  %v324_v22 = vrot.slane %v322_v13, 5  ;;  %v336_v40 = vshll.u32 %v3134_v15, 16 }
  0x29   : > { %2374 = vmatpush3.bf16.msra.mxu1 %v2716_v23  ;;  %2311 = vmatprep.subr.bf16.mxu0 %v2717_v24  ;;  %v2122_v20 = vcombine.low %v524_v4, %v527_v17  ;;  %v3144_v23 = vcombine.low %v3131_v14, %v3134_v15  ;;  %v2733_v24 = vld [vmem:[%s3717_s1 + $0x1c8] sm:$0xff]   ;;  %v329_v36 = vrot.slane %v327_v18, 4  ;;  %v346_v45 = vshll.u32 %v197_v38, 16 }
  0x2a   : > { %2375 = vmatprep.subr.bf16.mxu1 %v2718_v25  ;;  %1444 = vmatprep.mubr.bf16.mxu0 %v2106_v16  ;;  %v330_v25 = vshll.u32 %v3131_v14, 16  ;;  %v2116_v48 = vrot.slane %v3131_v14, 9  ;;  %v338_v52 = vrot.slane %v336_v40, 5  ;;  %v3186_v53 = vcombine.low %v3176_v46, %v3179_v47  ;;  %v3222_v16 = vld [vmem:[%s3061_s28 + $0x34] sm:$0xf] }
  0x2b   : > { %v348_v55 = vrot.slane %v346_v45, 5  ;;  %v354_v59 = vshll.u32 %v3176_v46, 16  ;;  %v364_v60 = vshrl.u32 %v3179_v47, 16  ;;  %v537_v63 = vrot.slane %v3134_v15, 5  ;;  %v203_v40 = vld [vmem:[%s3061_s28 + $0x38] sm:$0x1] }
  0x2c   : > { %2312 = vmatpush3.bf16.msra.mxu0 %v2719_v26  ;;  %v340_v26 = vshrl.u32 %v3134_v15, 16  ;;  %v332_v39 = vrot.slane %v330_v25, 5  ;;  %v540_v0 = vrot.slane %v197_v38, 5  ;;  %v360_v10 = vshll.u32 %v3179_v47, 16  ;;  %v3219_v15 = vld [vmem:[%s3061_s28 + $0x30] sm:$0xf] }
  0x2d   : > { %2376 = vmatpush3.bf16.msra.mxu1 %v2720_v27  ;;  %2313 = vmatprep.subr.bf16.mxu0 %v2721_v28  ;;  %v2115_v27 = vrot.slane %v3081_v41, 9  ;;  %v530_v28 = vrot.slane %v3084_v44, 5  ;;  %v538_v4 = vsel %vm3098_vm4, %v2116_v48, %v537_v63  ;;  %v539_v5 = vrot.slane %v537_v63, 4 }
  0x2e   : > { %2377 = vmatprep.subr.bf16.mxu1 %v2722_v29  ;;  %v315_v29 = vsel %vm3107_vm5, %v310_v9, %v314_v12  ;;  %v342_v41 = vrot.slane %v340_v26, 4  ;;  %v356_v9 = vrot.slane %v354_v59, 5  ;;  %v2117_v17 = vrot.slane %v3176_v46, 9 }
  0x2f   : > { %v531_v34 = vsel %vm3098_vm4, %v2115_v27, %v530_v28  ;;  %v532_v35 = vrot.slane %v530_v28, 4  ;;  %v541_v13 = vsel %vm3098_vm4, %v539_v5, %v540_v0  ;;  %v3234_v25 = vcombine.low %v3219_v15, %v3222_v16  ;;  %v2744_v28 = vld [vmem:[%s3717_s1 + $0x118] sm:$0xff]   ;;  %v2748_v0 = vld [vmem:[%s3717_s1 + $0x1e0] sm:$0xff]  }
  0x30   : > { %2314 = vmatpush3.bf16.msra.mxu0 %v2723_v30  ;;  %v320_v30 = vrot.slane %v319_v21, 4  ;;  %v343_v62 = vor.u32 %v342_v41, %v338_v52  ;;  %v362_v21 = vrot.slane %v360_v10, 5  ;;  %v375_v26 = vshrl.u32 %v3219_v15, 16 }
  0x31   : > { %2378 = vmatpush3.bf16.msra.mxu1 %v2724_v31  ;;  %2427 = vmatprep.subr.bf16.mxu0 %v2727_v51  ;;  %v533_v31 = vrot.slane %v194_v8, 5  ;;  %v333_v51 = vor.u32 %v332_v39, %v329_v36  ;;  %v378_v27 = vshll.u32 %v3219_v15, 16  ;;  %v2118_v45 = vrot.slane %v3219_v15, 9 }
  0x32   : > { %2491 = vmatprep.subr.bf16.mxu1 %v2728_v57  ;;  %v325_v37 = vsel %vm3107_vm5, %v320_v30, %v324_v22  ;;  %v351_v57 = vshrl.u32 %v3176_v46, 16  ;;  %v344_v3 = vrot.slane %v343_v62, 4  ;;  %v2743_v22 = vld [vmem:[%s3717_s1 + $0x1d8] sm:$0xff]   ;;  %v394_v48 = vshll.u32 %v203_v40, 16 }
  0x33   : > { %1445 = vmatmul.mubr.bf16.vlgmr.msra.gmra.mrb[0].mxu0 %v2098_v11  ;;  %v3171_v43 = vcombine.low %v315_v29, %v325_v37  ;;  %v534_v44 = vsel %vm3098_vm4, %v532_v35, %v533_v31  ;;  %v334_v61 = vrot.slane %v333_v51, 4  ;;  %v366_v11 = vrot.slane %v364_v60, 4  ;;  %v3262_v51 = vld [vmem:[%s3061_s28 + $0x3c] sm:$0xf]  ;;  %v2747_v60 = vld [vmem:[%s3717_s1 + $0x160] sm:$0xff]  }
  0x34   : > { %1542 = vmatmul.mubr.bf16.vlgmr.msra.gmra.mrb[0].mxu1 %v2122_v20  ;;  %2428 = vmatpush3.bf16.msra.mxu0 %v2729_v6  ;;  %v3182_v49 = vcombine.low %v531_v34, %v534_v44  ;;  %v2740_v6 = vld [vmem:[%s3717_s1 + $0x190] sm:$0xff]   ;;  %v353_v8 = vrot.slane %v351_v57, 4  ;;  %v349_v12 = vsel %vm3107_vm5, %v344_v3, %v348_v55  ;;  %v388_v31 = vshrl.u32 %v3222_v16, 16 }
  0x35   : > { %2492 = vmatpush3.bf16.msra.mxu1 %v2730_v7  ;;  %1549 = vmatprep.mubr.bf16.mxu1 %v3144_v23  ;;  %v339_v2 = vsel %vm3107_vm5, %v334_v61, %v338_v52  ;;  %v200_v7 = vld [vmem:[%s3061_s28 + $0x2c] sm:$0x1]  ;;  %v367_v30 = vor.u32 %v366_v11, %v362_v21  ;;  %v377_v35 = vrot.slane %v375_v26, 4  ;;  %v380_v41 = vrot.slane %v378_v27, 5  ;;  %v3265_v52 = vld [vmem:[%s3061_s28 + $0x40] sm:$0xf] }
  0x36   : > { %2429 = vmatprep.subr.bf16.mxu0 %v2732_v19  ;;  %2493 = vmatprep.subr.bf16.mxu1 %v2733_v24  ;;  %v370_v14 = vshll.u32 %v200_v7, 16  ;;  %v3225_v18 = vcombine.low %v339_v2, %v349_v12  ;;  %v3227_v19 = vcombine.low %v538_v4, %v541_v13  ;;  %v357_v20 = vor.u32 %v356_v9, %v353_v8  ;;  %v2750_v8 = vld [vmem:[%s3717_s1 + $0x1a0] sm:$0xff]  }
  0x37   : > { %1452 = vmatprep.mubr.bf16.mxu0 %v3171_v43  ;;  %v547_v34 = vrot.slane %v200_v7, 5  ;;  %v368_v37 = vrot.slane %v367_v30, 4  ;;  %v390_v44 = vrot.slane %v388_v31, 4  ;;  %v381_v57 = vor.u32 %v380_v41, %v377_v35  ;;  %v2749_v7 = vld [vmem:[%s3717_s1 + $0x120] sm:$0xff]   ;;  %v2753_v31 = vld [vmem:[%s3717_s1 + $0x1e8] sm:$0xff]  }
  0x38   : > { %2430 = vmatpush3.bf16.msra.mxu0 %v2734_v32  ;;  %v372_v24 = vrot.slane %v370_v14, 5  ;;  %v358_v29 = vrot.slane %v357_v20, 4  ;;  %v544_v32 = vrot.slane %v3179_v47, 5  ;;  %v396_v61 = vrot.slane %v394_v48, 5  ;;  %v206_v12 = vld [vmem:[%s3061_s28 + $0x44] sm:$0x1] }
  0x39   : > { %2494 = vmatpush3.bf16.msra.mxu1 %v2735_v33  ;;  %2431 = vmatprep.subr.bf16.mxu0 %v2737_v42  ;;  %v2745_v33 = vld [vmem:[%s3717_s1 + $0x198] sm:$0xff]   ;;  %v384_v42 = vshll.u32 %v3222_v16, 16  ;;  %v399_v62 = vshrl.u32 %v3262_v51, 16  ;;  %v402_v63 = vshll.u32 %v3262_v51, 16  ;;  %v382_v2 = vrot.slane %v381_v57, 4  ;;  %v2757_v48 = vld [vmem:[%s3717_s1 + $0x170] sm:$0xff]  }
  0x3a   : > { %2495 = vmatprep.subr.bf16.mxu1 %v2738_v54  ;;  %v363_v36 = vsel %vm3107_vm5, %v358_v29, %v362_v21  ;;  %v545_v38 = vsel %vm3098_vm4, %v2117_v17, %v544_v32  ;;  %v546_v39 = vrot.slane %v544_v32, 4  ;;  %v373_v46 = vsel %vm3107_vm5, %v368_v37, %v372_v24  ;;  %v3309_v24 = vld [vmem:[%s3061_s28 + $0x4c] sm:$0xf] }
  0x3b   : > { %1453 = vmatmul.mubr.bf16.gmra.mrb[4].mxu0 %v3090_v50  ;;  %v2742_v50 = vld [vmem:[%s3717_s1 + $0x158] sm:$0xff]   ;;  %v551_v54 = vrot.slane %v3222_v16, 5  ;;  %v3268_v55 = vcombine.low %v363_v36, %v373_v46  ;;  %v386_v59 = vrot.slane %v384_v42, 5  ;;  %v412_v4 = vshrl.u32 %v3265_v52, 16  ;;  %v2752_v16 = vld [vmem:[%s3717_s1 + $0x168] sm:$0xff]  }
  0x3c   : > { %1550 = vmatmul.mubr.bf16.gmra.mrb[4].mxu1 %v3182_v49  ;;  %2432 = vmatpush3.bf16.msra.mxu0 %v2739_v1  ;;  %v548_v47 = vsel %vm3098_vm4, %v546_v39, %v547_v34  ;;  %v3284_v5 = vcombine.low %v3262_v51, %v3265_v52  ;;  %v401_v11 = vrot.slane %v399_v62, 4  ;;  %v404_v13 = vrot.slane %v402_v63, 5  ;;  %v3349_v63 = vld [vmem:[%s3061_s28 + $0x54] sm:$0xf] }
  0x3d   : > { %1557 = vmatprep.mubr.bf16.mxu1 %v3186_v53  ;;  %2496 = vmatpush3.bf16.msra.mxu1 %v2740_v6  ;;  %v3279_v1 = vcombine.low %v545_v38, %v548_v47  ;;  %v391_v3 = vor.u32 %v390_v44, %v386_v59  ;;  %v553_v6 = vrot.slane %v551_v54, 4  ;;  %v387_v9 = vsel %vm3107_vm5, %v382_v2, %v386_v59  ;;  %v2755_v47 = vld [vmem:[%s3717_s1 + $0x1a8] sm:$0xff]  }
  0x3e   : > { %2433 = vmatprep.subr.bf16.mxu0 %v2742_v50  ;;  %1460 = vmatprep.mubr.bf16.mxu0 %v3225_v18  ;;  %v554_v50 = vrot.slane %v203_v40, 5  ;;  %v408_v14 = vshll.u32 %v3265_v52, 16  ;;  %v414_v15 = vrot.slane %v412_v4, 4  ;;  %v552_v20 = vsel %vm3098_vm4, %v2118_v45, %v551_v54  ;;  %v2754_v40 = vld [vmem:[%s3717_s1 + $0x128] sm:$0xff]  }
  0x3f   : > { %2497 = vmatprep.subr.bf16.mxu1 %v2743_v22  ;;  %v392_v10 = vrot.slane %v391_v3, 4  ;;  %v418_v21 = vshll.u32 %v206_v12, 16  ;;  %v3306_v22 = vld [vmem:[%s3061_s28 + $0x48] sm:$0xf]  ;;  %v2119_v26 = vrot.slane %v3262_v51, 9  ;;  %v405_v29 = vor.u32 %v404_v13, %v401_v11 }
  0x40   : > { %2434 = vmatpush3.bf16.msra.mxu0 %v2744_v28  ;;  %v555_v28 = vsel %vm3098_vm4, %v553_v6, %v554_v50  ;;  %v410_v30 = vrot.slane %v408_v14, 5  ;;  %v426_v34 = vshll.u32 %v3306_v22, 16  ;;  %v436_v35 = vshrl.u32 %v3309_v24, 16  ;;  %v209_v51 = vld [vmem:[%s3061_s28 + $0x50] sm:$0x1] }
  0x41   : > { %2498 = vmatpush3.bf16.msra.mxu1 %v2745_v33  ;;  %2435 = vmatprep.subr.bf16.mxu0 %v2747_v60  ;;  %v397_v17 = vsel %vm3107_vm5, %v392_v10, %v396_v61  ;;  %v420_v32 = vrot.slane %v418_v21, 5  ;;  %v423_v33 = vshrl.u32 %v3306_v22, 16  ;;  %v406_v36 = vrot.slane %v405_v29, 4  ;;  %v2758_v50 = vld [vmem:[%s3717_s1 + $0x1f0] sm:$0xff]  }
  0x42   : > { %2499 = vmatprep.subr.bf16.mxu1 %v2748_v0  ;;  %v3312_v27 = vcombine.low %v387_v9, %v397_v17  ;;  %v415_v37 = vor.u32 %v414_v15, %v410_v30  ;;  %v558_v38 = vrot.slane %v3265_v52, 5  ;;  %v561_v39 = vrot.slane %v206_v12, 5  ;;  %v3352_v0 = vld [vmem:[%s3061_s28 + $0x58] sm:$0xf]  ;;  %v2759_v10 = vld [vmem:[%s3717_s1 + $0x130] sm:$0xff]  }
  0x43   : > { %1461 = vmatmul.mubr.bf16.gmra.mrb[8].mxu0 %v3144_v23  ;;  %v3328_v41 = vcombine.low %v552_v20, %v555_v28  ;;  %v411_v42 = vsel %vm3107_vm5, %v406_v36, %v410_v30  ;;  %v3334_v45 = vcombine.low %v3306_v22, %v3309_v24  ;;  %v425_v52 = vrot.slane %v423_v33, 4  ;;  %v2760_v15 = vld [vmem:[%s3717_s1 + $0x1b0] sm:$0xff]   ;;  %v212_v30 = vld [vmem:[%s3061_s28 + $0x5c] sm:$0x1] }
  0x44   : > { %1558 = vmatmul.mubr.bf16.gmra.mrb[8].mxu1 %v3227_v19  ;;  %1468 = vmatprep.mubr.bf16.mxu0 %v3268_v55  ;;  %v416_v44 = vrot.slane %v415_v37, 4  ;;  %v560_v46 = vrot.slane %v558_v38, 4  ;;  %v428_v54 = vrot.slane %v426_v34, 5  ;;  %v432_v57 = vshll.u32 %v3309_v24, 16 }
  0x45   : > { %1565 = vmatprep.mubr.bf16.mxu1 %v3234_v25  ;;  %2436 = vmatpush3.bf16.msra.mxu0 %v2749_v7  ;;  %v438_v59 = vrot.slane %v436_v35, 4  ;;  %v559_v61 = vsel %vm3098_vm4, %v2119_v26, %v558_v38  ;;  %v442_v62 = vshll.u32 %v209_v51, 16  ;;  %v450_v9 = vshll.u32 %v3349_v63, 16  ;;  %v2762_v38 = vld [vmem:[%s3717_s1 + $0x178] sm:$0xff]  }
  0x46   : > { %2500 = vmatpush3.bf16.msra.mxu1 %v2750_v8  ;;  %2437 = vmatprep.subr.bf16.mxu0 %v2752_v16  ;;  %v421_v60 = vsel %vm3107_vm5, %v416_v44, %v420_v32  ;;  %v562_v3 = vsel %vm3098_vm4, %v560_v46, %v561_v39  ;;  %v429_v4 = vor.u32 %v428_v54, %v425_v52  ;;  %v434_v6 = vrot.slane %v432_v57, 5  ;;  %v2763_v46 = vld [vmem:[%s3717_s1 + $0x1f8] sm:$0xff]  }
  0x47   : > { %2501 = vmatprep.subr.bf16.mxu1 %v2753_v31  ;;  %v3356_v2 = vcombine.low %v411_v42, %v421_v60  ;;  %v444_v7 = vrot.slane %v442_v62, 5  ;;  %v447_v8 = vshrl.u32 %v3349_v63, 16  ;;  %v460_v13 = vshrl.u32 %v3352_v0, 16  ;;  %v3401_v42 = vld [vmem:[%s3061_s28 + $0x64] sm:$0xf]  ;;  %v2764_v57 = vld [vmem:[%s3717_s1 + $0x138] sm:$0xff]  }
  0x48   : > { %v430_v11 = vrot.slane %v429_v4, 4  ;;  %v439_v12 = vor.u32 %v438_v59, %v434_v6  ;;  %v565_v14 = vrot.slane %v3309_v24, 5  ;;  %v3375_v16 = vcombine.low %v559_v61, %v562_v3  ;;  %v2765_v59 = vld [vmem:[%s3717_s1 + $0x1b8] sm:$0xff]   ;;  %v2766_v62 = vld [vmem:[%s3717_s1 + $0x200] sm:$0xff]  }
  0x49   : > { %2438 = vmatpush3.bf16.msra.mxu0 %v2754_v40  ;;  %v2120_v17 = vrot.slane %v3306_v22, 9  ;;  %v449_v20 = vrot.slane %v447_v8, 4  ;;  %v3382_v28 = vcombine.low %v3349_v63, %v3352_v0  ;;  %v568_v24 = vrot.slane %v209_v51, 5  ;;  %v3398_v40 = vld [vmem:[%s3061_s28 + $0x60] sm:$0xf] }
  0x4a   : > { %2502 = vmatpush3.bf16.msra.mxu1 %v2755_v47  ;;  %2439 = vmatprep.subr.bf16.mxu0 %v2757_v48  ;;  %v435_v21 = vsel %vm3107_vm5, %v430_v11, %v434_v6  ;;  %v440_v26 = vrot.slane %v439_v12, 4  ;;  %v567_v29 = vrot.slane %v565_v14, 4  ;;  %v452_v31 = vrot.slane %v450_v9, 5 }
  0x4b   : > { %1469 = vmatmul.mubr.bf16.gmra.mrb[12].mxu0 %v3186_v53  ;;  %2503 = vmatprep.subr.bf16.mxu1 %v2758_v50  ;;  %v456_v32 = vshll.u32 %v3352_v0, 16  ;;  %v462_v22 = vrot.slane %v460_v13, 4  ;;  %v466_v34 = vshll.u32 %v212_v30, 16  ;;  %v566_v39 = vsel %vm3098_vm4, %v2120_v17, %v565_v14 }
  0x4c   : > { %1566 = vmatmul.mubr.bf16.gmra.mrb[12].mxu1 %v3279_v1  ;;  %1476 = vmatprep.mubr.bf16.mxu0 %v3312_v27  ;;  %v445_v33 = vsel %vm3107_vm5, %v440_v26, %v444_v7  ;;  %v453_v36 = vor.u32 %v452_v31, %v449_v20  ;;  %v572_v44 = vrot.slane %v3352_v0, 5  ;;  %v569_v47 = vsel %vm3098_vm4, %v567_v29, %v568_v24  ;;  %v215_v20 = vld [vmem:[%s3061_s28 + $0x68] sm:$0x1]  ;;  %v3486_v26 = vld [vmem:[%s3061_s28 + $0x70] sm:$0xf]  ;;  %v2774_v24 = vld [vmem:[%s3717_s1 + $0x238] sm:$0xff]  }
  0x4d   : > { %1573 = vmatprep.mubr.bf16.mxu1 %v3284_v5  ;;  %2440 = vmatpush3.bf16.msra.mxu0 %v2759_v10  ;;  %v3388_v35 = vcombine.low %v435_v21, %v445_v33  ;;  %v458_v37 = vrot.slane %v456_v32, 5  ;;  %v468_v52 = vrot.slane %v466_v34, 5  ;;  %v2121_v54 = vrot.slane %v3349_v63, 9  ;;  %v2767_v10 = vld [vmem:[%s3717_s1 + $0x208] sm:$0xff]  }
  0x4e   : > { %2504 = vmatpush3.bf16.msra.mxu1 %v2760_v15  ;;  %v454_v48 = vrot.slane %v453_v36, 4  ;;  %2441 = vmatprep.subr.bf16.mxu0 %v2762_v38  ;;  %v3423_v0 = vcombine.low %v566_v39, %v569_v47  ;;  %v3429_v3 = vcombine.low %v3398_v40, %v3401_v42  ;;  %v574_v4 = vrot.slane %v572_v44, 4  ;;  %v3483_v21 = vld [vmem:[%s3061_s28 + $0x6c] sm:$0xf] }
  0x4f   : > { %v463_v51 = vor.u32 %v462_v22, %v458_v37  ;;  %2505 = vmatprep.subr.bf16.mxu1 %v2763_v46  ;;  %v575_v6 = vrot.slane %v212_v30, 5  ;;  %v573_v7 = vsel %vm3098_vm4, %v2121_v54, %v572_v44  ;;  %v635_v11 = vshll.u32 %v3398_v40, 16  ;;  %v218_v46 = vld [vmem:[%s3061_s28 + $0x74] sm:$0x1]  ;;  %s2779_s28 = sshll.u32 %s2871_s6, 4  ;;  %s2780_s28 = int_to_ptr.vmem [resolvable:$false] %s2779_s28 }
  0x50   : > { %v459_v60 = vsel %vm3107_vm5, %v454_v48, %v458_v37  ;;  %v645_v12 = vshrl.u32 %v3401_v42, 16  ;;  %v641_v13 = vshll.u32 %v3401_v42, 16  ;;  %v651_v31 = vshll.u32 %v215_v20, 16  ;;  %s2781_s7 = scalar_lea.vmem %s2780_s28, 2048  ;;  %p2782_p2 = scmp.lt.s32.totalorder %s3656_s27, %s2780_s28 }
  0x51   : > { %v464_v61 = vrot.slane %v463_v51, 4  ;;  %2442 = vmatpush3.bf16.msra.mxu0 %v2764_v57  ;;  %v576_v8 = vsel %vm3098_vm4, %v574_v4, %v575_v6  ;;  %v637_v14 = vrot.slane %v635_v11, 5  ;;  %v702_v32 = vshrl.u32 %v3483_v21, 16  ;;  %p2783_p4 = scmp.lt.s32.totalorder %s2781_s7, %s2775_s29 }
  0x52   : > { %2506 = vmatpush3.bf16.msra.mxu1 %v2765_v59  ;;  %2571 = vmatprep.subr.bf16.mxu0 %v2766_v62  ;;  %v3441_v9 = vcombine.low %v573_v7, %v576_v8  ;;  %v643_v15 = vrot.slane %v641_v13, 5  ;;  %v647_v17 = vrot.slane %v645_v12, 4  ;;  %v705_v22 = vshll.u32 %v3483_v21, 16 }
  0x53   : > { %1477 = vmatmul.mubr.bf16.gmra.mrb[16].mxu0 %v3234_v25  ;;  %v469_v63 = vsel %vm3107_vm5, %v464_v61, %v468_v52  ;;  %2603 = vmatprep.subr.bf16.mxu1 %v2766_v62  ;;  %v711_v33 = vshll.u32 %v3486_v26, 16  ;;  %v653_v36 = vrot.slane %v651_v31, 5  ;;  %v704_v37 = vrot.slane %v702_v32, 4  ;;  %p2784_p5 = por %p2783_p4, %p2782_p2 }
  0x54   : > { %1574 = vmatmul.mubr.bf16.gmra.mrb[16].mxu1 %v3328_v41  ;;  %1484 = vmatprep.mubr.bf16.mxu0 %v3356_v2  ;;  %v3431_v50 = vcombine.low %v459_v60, %v469_v63  ;;  %v648_v30 = vor.u32 %v647_v17, %v643_v15  ;;  %v707_v38 = vrot.slane %v705_v22, 5  ;;  %v670_v48 = vrot.slane %v3401_v42, 5 }
  0x55   : > { %1581 = vmatprep.mubr.bf16.mxu1 %v3334_v45  ;;  %v713_v39 = vrot.slane %v711_v33, 5  ;;  %v721_v57 = vshll.u32 %v218_v46, 16  ;;  %v673_v60 = vrot.slane %v215_v20, 5  ;;  %v740_v58 = vrot.slane %v3486_v26, 5  ;;  %p2785_p6 = pnand %p2784_p5, %p2778_p1 }
  0x56   : > { %v649_v34 = vrot.slane %v648_v30, 4  ;;  %v708_v52 = vor.u32 %v707_v38, %v704_v37 }
  0x57   : > { %v723_v63 = vrot.slane %v721_v57, 5 }
  0x58   : > { %v654_v51 = vsel %vm3107_vm5, %v649_v34, %v653_v36  ;;  %v709_v61 = vrot.slane %v708_v52, 4 }
  0x5b   : > { %1485 = vmatmul.mubr.bf16.gmra.mrb[20].mxu0 %v3284_v5 }
  0x5c   : > { %1582 = vmatmul.mubr.bf16.gmra.mrb[20].mxu1 %v3375_v16  ;;  %1492 = vmatprep.mubr.bf16.mxu0 %v3388_v35 }
  0x5d   : > { %1589 = vmatprep.mubr.bf16.mxu1 %v3382_v28 }
  0x63   : > { %1493 = vmatmul.mubr.bf16.gmra.mrb[24].mxu0 %v3334_v45 }
  0x64   : > { %1590 = vmatmul.mubr.bf16.gmra.mrb[24].mxu1 %v3423_v0  ;;  %1500 = vmatprep.mubr.bf16.mxu0 %v3431_v50 }
  0x65   : > { %1597 = vmatprep.mubr.bf16.mxu1 %v3429_v3 }
  0x6b   : > { %1501 = vmatmul.mubr.bf16.gmra.mrb[28].mxu0 %v3382_v28 }
  0x6c   : > { %1598 = vmatmul.mubr.bf16.gmra.mrb[28].mxu1 %v3441_v9  ;;  %1638 = vmatprep.mubr.bf16.mxu0 %v3182_v49  ;;  %v2768_v49 = vld [vmem:[%s3717_s1 + $0x210] sm:$0xff]  }
  0x6d   : > { %1735 = vmatprep.mubr.bf16.mxu1 %v3225_v18 }
  0x73   : > { %1639 = vmatmul.mubr.bf16.vlgmr.msra.gmra.mrb[32].mxu0 %v3171_v43  ;;  %v2770_v43 = vld [vmem:[%s3717_s1 + $0x220] sm:$0xff]  }
  0x74   : > { %1736 = vmatmul.mubr.bf16.vlgmr.msra.gmra.mrb[32].mxu1 %v3144_v23  ;;  %2572 = vmatpush3.bf16.msra.mxu0 %v2766_v62  ;;  %v2769_v23 = vld [vmem:[%s3717_s1 + $0x218] sm:$0xff]  }
  0x75   : > { %2611 = vmatpush3.bf16.msra.mxu1 %v2766_v62  ;;  %1646 = vmatprep.mubr.bf16.mxu0 %v3227_v19 }
  0x76   : > { %1743 = vmatprep.mubr.bf16.mxu1 %v3268_v55  ;;  %2573 = vmatprep.subr.bf16.mxu0 %v2767_v10 }
  0x77   : > { %2604 = vmatprep.subr.bf16.mxu1 %v2767_v10 }
  0x78   : > { %2574 = vmatpush3.bf16.msra.mxu0 %v2767_v10 }
  0x79   : > { %2612 = vmatpush3.bf16.msra.mxu1 %v2767_v10  ;;  %2575 = vmatprep.subr.bf16.mxu0 %v2768_v49  ;;  %v742_v10 = vrot.slane %v740_v58, 4 }
  0x7a   : > { %2605 = vmatprep.subr.bf16.mxu1 %v2768_v49 }
  0x7b   : > { %1647 = vmatmul.mubr.bf16.gmra.mrb[36].mxu0 %v3225_v18  ;;  %v632_v18 = vshrl.u32 %v3398_v40, 16 }
  0x7c   : > { %1744 = vmatmul.mubr.bf16.gmra.mrb[36].mxu1 %v3186_v53  ;;  %1654 = vmatprep.mubr.bf16.mxu0 %v3279_v1  ;;  %v2771_v53 = vld [vmem:[%s3717_s1 + $0x228] sm:$0xff]  }
  0x7d   : > { %1751 = vmatprep.mubr.bf16.mxu1 %v3312_v27  ;;  %2576 = vmatpush3.bf16.msra.mxu0 %v2768_v49 }
  0x7e   : > { %2613 = vmatpush3.bf16.msra.mxu1 %v2768_v49  ;;  %2577 = vmatprep.subr.bf16.mxu0 %v2769_v23  ;;  %v743_v49 = vrot.slane %v218_v46, 5 }
  0x7f   : > { %2606 = vmatprep.subr.bf16.mxu1 %v2769_v23 }
  0x81   : > { %2578 = vmatpush3.bf16.msra.mxu0 %v2769_v23 }
  0x82   : > { %2614 = vmatpush3.bf16.msra.mxu1 %v2769_v23  ;;  %2579 = vmatprep.subr.bf16.mxu0 %v2770_v43 }
  0x83   : > { %2607 = vmatprep.subr.bf16.mxu1 %v2770_v43  ;;  %1655 = vmatmul.mubr.bf16.gmra.mrb[40].mxu0 %v3268_v55  ;;  %v634_v55 = vrot.slane %v632_v18, 4 }
  0x84   : > { %1752 = vmatmul.mubr.bf16.gmra.mrb[40].mxu1 %v3234_v25  ;;  %1662 = vmatprep.mubr.bf16.mxu0 %v3328_v41  ;;  %v2772_v25 = vld [vmem:[%s3717_s1 + $0x230] sm:$0xff]  }
  0x85   : > { %1759 = vmatprep.mubr.bf16.mxu1 %v3356_v2  ;;  %2580 = vmatpush3.bf16.msra.mxu0 %v2770_v43  ;;  %v638_v29 = vor.u32 %v637_v14, %v634_v55 }
  0x86   : > { %2615 = vmatpush3.bf16.msra.mxu1 %v2770_v43  ;;  %2581 = vmatprep.subr.bf16.mxu0 %v2771_v53 }
  0x87   : > { %2608 = vmatprep.subr.bf16.mxu1 %v2771_v53 }
  0x89   : > { %2582 = vmatpush3.bf16.msra.mxu0 %v2771_v53 }
  0x8a   : > { %2616 = vmatpush3.bf16.msra.mxu1 %v2771_v53  ;;  %2583 = vmatprep.subr.bf16.mxu0 %v2772_v25 }
  0x8b   : > { %2609 = vmatprep.subr.bf16.mxu1 %v2772_v25  ;;  %1663 = vmatmul.mubr.bf16.gmra.mrb[44].mxu0 %v3312_v27  ;;  %v715_v27 = vshrl.u32 %v3486_v26, 16 }
  0x8c   : > { %1760 = vmatmul.mubr.bf16.gmra.mrb[44].mxu1 %v3284_v5  ;;  %1670 = vmatprep.mubr.bf16.mxu0 %v3375_v16  ;;  %v639_v5 = vrot.slane %v638_v29, 4 }
  0x8d   : > { %1767 = vmatprep.mubr.bf16.mxu1 %v3388_v35  ;;  %2584 = vmatpush3.bf16.msra.mxu0 %v2772_v25  ;;  %v717_v44 = vrot.slane %v715_v27, 4 }
  0x8e   : > { %2617 = vmatpush3.bf16.msra.mxu1 %v2772_v25  ;;  %2585 = vmatprep.subr.bf16.mxu0 %v2774_v24  ;;  %v644_v47 = vsel %vm3107_vm5, %v639_v5, %v643_v15 }
  0x8f   : > { %2610 = vmatprep.subr.bf16.mxu1 %v2774_v24  ;;  %v718_v54 = vor.u32 %v717_v44, %v713_v39  ;;  %v2131_v59 = vcombine.low %v644_v47, %v654_v51 }
  0x91   : > { %2586 = vmatpush3.bf16.msra.mxu0 %v2774_v24  ;;  %v719_v62 = vrot.slane %v718_v54, 4 }
  0x92   : > { %2618 = vmatpush3.bf16.msra.mxu1 %v2774_v24 }
  0x93   : > { %1671 = vmatmul.mubr.bf16.gmra.mrb[48].mxu0 %v3356_v2  ;;  %v2132_v2 = vrot.slane %v3398_v40, 9  ;;  %v714_v40 = vsel %vm3107_vm5, %v709_v61, %v713_v39  ;;  %v724_v6 = vsel %vm3107_vm5, %v719_v62, %v723_v63 }
  0x94   : > { %1768 = vmatmul.mubr.bf16.gmra.mrb[48].mxu1 %v3334_v45  ;;  %1678 = vmatprep.mubr.bf16.mxu0 %v3423_v0  ;;  %v672_v45 = vrot.slane %v670_v48, 4  ;;  %v2135_v8 = vcombine.low %v714_v40, %v724_v6 }
  0x95   : > { %1775 = vmatprep.mubr.bf16.mxu1 %v3431_v50  ;;  %v671_v42 = vsel %vm3098_vm4, %v2132_v2, %v670_v48 }
  0x96   : > { %v674_v4 = vsel %vm3098_vm4, %v672_v45, %v673_v60 }
  0x97   : > { %v2133_v7 = vcombine.low %v671_v42, %v674_v4 }
  0x9b   : > { %1679 = vmatmul.mubr.bf16.gmra.mrb[52].mxu0 %v3388_v35  ;;  %v2136_v35 = vrot.slane %v3483_v21, 9 }
  0x9c   : > { %1776 = vmatmul.mubr.bf16.gmra.mrb[52].mxu1 %v3382_v28  ;;  %1686 = vmatprep.mubr.bf16.mxu0 %v3441_v9  ;;  %v2134_v28 = vcombine.low %v3483_v21, %v3486_v26 }
  0x9d   : > { %1783 = vmatprep.mubr.bf16.mxu1 %v2131_v59 }
  0xa3   : > { %1687 = vmatmul.mubr.bf16.gmra.mrb[56].mxu0 %v3431_v50 }
  0xa4   : > { %1784 = vmatmul.mubr.bf16.gmra.mrb[56].mxu1 %v3429_v3  ;;  %1694 = vmatprep.mubr.bf16.mxu0 %v2133_v7  ;;  %v741_v3 = vsel %vm3098_vm4, %v2136_v35, %v740_v58 }
  0xa5   : > { %1791 = vmatprep.mubr.bf16.mxu1 %v2135_v8 }
  0xab   : > { %1695 = vmatmul.mubr.bf16.gmra.mrb[60].mxu0 %v2131_v59 }
  0xac   : > { %1792 = vmatmul.mubr.bf16.gmra.mrb[60].mxu1 %v2134_v28  ;;  %2587 = vmatprep.mubr.bf16.mxu0 %v3227_v19  ;;  %v744_v19 = vsel %vm3098_vm4, %v742_v10, %v743_v49 }
  0xad   : > { %2595 = vmatprep.mubr.bf16.mxu1 %v3423_v0  ;;  %v2137_v0 = vcombine.low %v741_v3, %v744_v19 }
  0xb3   : > { %2588 = vmatmul.mubr.bf16.vlgmr.msra.gmra.mrb[64].mxu0 %v3279_v1  ;;  %v3540_v1 = vld [vmem:[%s3718_s2] ss:$0 sm:$0xff] }
  0xb4   : > { %2596 = vmatmul.mubr.bf16.vlgmr.msra.gmra.mrb[64].mxu1 %v3441_v9  ;;  %2591 = vmatprep.mubr.bf16.mxu0 %v3328_v41 }
  0xb5   : > { %2599 = vmatprep.mubr.bf16.mxu1 %v2133_v7 }
  0xbb   : > { %2592 = vmatmul.mubr.bf16.gmra.mrb[68].mxu0 %v3375_v16 }
  0xbc   : > { %2600 = vmatmul.mubr.bf16.gmra.mrb[68].mxu1 %v2137_v0 }
 0x106   : > { %v2315_v50 = vpop.f32.mrb[0].mxu0 }
 0x107   : > { %v2379_v23 = vpop.f32.mrb[0].mxu1  ;;  %v2316_v9 = vpop.f32.mrb[1].mxu0 }
 0x108   : > { %v2380_v41 = vpop.f32.mrb[1].mxu1  ;;  %v2317_v43 = vadd.f32 %v2316_v9, %v2315_v50  ;;  %v2318_v18 = vpop.f32.mrb[2].mxu0 }
 0x109   : > { %v2381_v53 = vadd.f32 %v2380_v41, %v2379_v23  ;;  %v2382_v11 = vpop.f32.mrb[2].mxu1  ;;  %v2319_v12 = vpop.f32.mrb[3].mxu0 }
 0x10a   : > { %v2383_v56 = vpop.f32.mrb[3].mxu1  ;;  %v1447_v13 = vadd.f32 %v2317_v43, %v3540_v1  ;;  %v2320_v25 = vadd.f32 %v2319_v12, %v2318_v18 }
 0x10b   : > { %v2384_v16 = vadd.f32 %v2383_v56, %v2382_v11 }
 0x10c   : > { %v3543_v55 = vadd.f32 %v2381_v53, %v1447_v13  ;;  %v1450_v14 = vadd.f32 %v2320_v25, %v3540_v1 }
 0x10e   : > { %v3546_v15 = vadd.f32 %v2384_v16, %v1450_v14  ;;  %v2321_v17 = vpop.f32.mrb[4].mxu0 }
 0x10f   : > { %v2385_v20 = vpop.f32.mrb[4].mxu1  ;;  %v2322_v21 = vpop.f32.mrb[5].mxu0 }
 0x110   : > { %v2386_v26 = vpop.f32.mrb[5].mxu1  ;;  %v2323_v24 = vadd.f32 %v2322_v21, %v2321_v17  ;;  %v2324_v30 = vpop.f32.mrb[6].mxu0 }
 0x111   : > { %v2387_v29 = vadd.f32 %v2386_v26, %v2385_v20  ;;  %v2388_v31 = vpop.f32.mrb[6].mxu1  ;;  %v2325_v32 = vpop.f32.mrb[7].mxu0 }
 0x112   : > { %v2389_v22 = vpop.f32.mrb[7].mxu1  ;;  %v1455_v33 = vadd.f32 %v2323_v24, %v3540_v1  ;;  %v2326_v27 = vadd.f32 %v2325_v32, %v2324_v30 }
 0x113   : > { %v2390_v5 = vadd.f32 %v2389_v22, %v2388_v31 }
 0x114   : > { %v3549_v34 = vadd.f32 %v2387_v29, %v1455_v33  ;;  %v1458_v36 = vadd.f32 %v2326_v27, %v3540_v1 }
 0x116   : > { %v3552_v37 = vadd.f32 %v2390_v5, %v1458_v36  ;;  %v2327_v38 = vpop.f32.mrb[8].mxu0 }
 0x117   : > { %v2391_v39 = vpop.f32.mrb[8].mxu1  ;;  %v2328_v44 = vpop.f32.mrb[9].mxu0 }
 0x118   : > { %v2392_v46 = vpop.f32.mrb[9].mxu1  ;;  %v2329_v47 = vadd.f32 %v2328_v44, %v2327_v38  ;;  %v2330_v51 = vpop.f32.mrb[10].mxu0 }
 0x119   : > { %v2393_v48 = vadd.f32 %v2392_v46, %v2391_v39  ;;  %v2394_v52 = vpop.f32.mrb[10].mxu1  ;;  %v2331_v54 = vpop.f32.mrb[11].mxu0 }
 0x11a   : > { %v2395_v57 = vpop.f32.mrb[11].mxu1  ;;  %v1463_v59 = vadd.f32 %v2329_v47, %v3540_v1  ;;  %v2332_v2 = vadd.f32 %v2331_v54, %v2330_v51 }
 0x11b   : > { %v2396_v60 = vadd.f32 %v2395_v57, %v2394_v52 }
 0x11c   : > { %v3555_v45 = vadd.f32 %v2393_v48, %v1463_v59  ;;  %v1466_v61 = vadd.f32 %v2332_v2, %v3540_v1 }
 0x11e   : > { %v3558_v62 = vadd.f32 %v2396_v60, %v1466_v61  ;;  %v2333_v63 = vpop.f32.mrb[12].mxu0 }
 0x11f   : > { %v2397_v42 = vpop.f32.mrb[12].mxu1  ;;  %v2334_v4 = vpop.f32.mrb[13].mxu0 }
 0x120   : > { %v2398_v40 = vpop.f32.mrb[13].mxu1  ;;  %v2335_v6 = vadd.f32 %v2334_v4, %v2333_v63  ;;  %v2336_v8 = vpop.f32.mrb[14].mxu0 }
 0x121   : > { %v2399_v7 = vadd.f32 %v2398_v40, %v2397_v42  ;;  %v2400_v28 = vpop.f32.mrb[14].mxu1  ;;  %v2337_v58 = vpop.f32.mrb[15].mxu0 }
 0x122   : > { %v2401_v35 = vpop.f32.mrb[15].mxu1  ;;  %v1471_v10 = vadd.f32 %v2335_v6, %v3540_v1  ;;  %v2338_v49 = vadd.f32 %v2337_v58, %v2336_v8 }
 0x123   : > { %v2402_v3 = vadd.f32 %v2401_v35, %v2400_v28 }
 0x124   : > { %v3561_v19 = vadd.f32 %v2399_v7, %v1471_v10  ;;  %v1474_v0 = vadd.f32 %v2338_v49, %v3540_v1 }
 0x126   : > { %v3564_v50 = vadd.f32 %v2402_v3, %v1474_v0  ;;  %v2339_v23 = vpop.f32.mrb[16].mxu0 }
 0x127   : > { %v2403_v9 = vpop.f32.mrb[16].mxu1  ;;  %v2340_v41 = vpop.f32.mrb[17].mxu0 }
 0x128   : > { %v2404_v43 = vpop.f32.mrb[17].mxu1  ;;  %v2341_v53 = vadd.f32 %v2340_v41, %v2339_v23  ;;  %v2342_v11 = vpop.f32.mrb[18].mxu0 }
 0x129   : > { %v2405_v18 = vadd.f32 %v2404_v43, %v2403_v9  ;;  %v2406_v12 = vpop.f32.mrb[18].mxu1  ;;  %v2343_v56 = vpop.f32.mrb[19].mxu0 }
 0x12a   : > { %v2407_v13 = vpop.f32.mrb[19].mxu1  ;;  %v1479_v25 = vadd.f32 %v2341_v53, %v3540_v1  ;;  %v2344_v16 = vadd.f32 %v2343_v56, %v2342_v11 }
 0x12b   : > { %v2408_v14 = vadd.f32 %v2407_v13, %v2406_v12 }
 0x12c   : > { %v3567_v17 = vadd.f32 %v2405_v18, %v1479_v25  ;;  %v1482_v20 = vadd.f32 %v2344_v16, %v3540_v1 }
 0x12e   : > { %v3570_v21 = vadd.f32 %v2408_v14, %v1482_v20  ;;  %v2345_v26 = vpop.f32.mrb[20].mxu0 }
 0x12f   : > { %v2409_v24 = vpop.f32.mrb[20].mxu1  ;;  %v2346_v29 = vpop.f32.mrb[21].mxu0 }
 0x130   : > { %v2410_v30 = vpop.f32.mrb[21].mxu1  ;;  %v2347_v31 = vadd.f32 %v2346_v29, %v2345_v26  ;;  %v2348_v22 = vpop.f32.mrb[22].mxu0 }
 0x131   : > { %v2411_v32 = vadd.f32 %v2410_v30, %v2409_v24  ;;  %v2412_v33 = vpop.f32.mrb[22].mxu1  ;;  %v2349_v27 = vpop.f32.mrb[23].mxu0 }
 0x132   : > { %v2413_v5 = vpop.f32.mrb[23].mxu1  ;;  %v1487_v36 = vadd.f32 %v2347_v31, %v3540_v1  ;;  %v2350_v38 = vadd.f32 %v2349_v27, %v2348_v22 }
 0x133   : > { %v2414_v39 = vadd.f32 %v2413_v5, %v2412_v33 }
 0x134   : > { %v3573_v44 = vadd.f32 %v2411_v32, %v1487_v36  ;;  %v1490_v46 = vadd.f32 %v2350_v38, %v3540_v1 }
 0x136   : > { %v3576_v47 = vadd.f32 %v2414_v39, %v1490_v46  ;;  %v2351_v48 = vpop.f32.mrb[24].mxu0 }
 0x137   : > { %v2415_v51 = vpop.f32.mrb[24].mxu1  ;;  %v2352_v52 = vpop.f32.mrb[25].mxu0 }
 0x138   : > { %v2416_v54 = vpop.f32.mrb[25].mxu1  ;;  %v2353_v57 = vadd.f32 %v2352_v52, %v2351_v48  ;;  %v2354_v2 = vpop.f32.mrb[26].mxu0 }
 0x139   : > { %v2417_v59 = vadd.f32 %v2416_v54, %v2415_v51  ;;  %v2418_v60 = vpop.f32.mrb[26].mxu1  ;;  %v2355_v61 = vpop.f32.mrb[27].mxu0 }
 0x13a   : > { %v2419_v63 = vpop.f32.mrb[27].mxu1  ;;  %v1495_v42 = vadd.f32 %v2353_v57, %v3540_v1  ;;  %v2356_v4 = vadd.f32 %v2355_v61, %v2354_v2 }
 0x13b   : > { %v2420_v40 = vadd.f32 %v2419_v63, %v2418_v60 }
 0x13c   : > { %v3579_v6 = vadd.f32 %v2417_v59, %v1495_v42  ;;  %v1498_v7 = vadd.f32 %v2356_v4, %v3540_v1 }
 0x13e   : > { %v3582_v8 = vadd.f32 %v2420_v40, %v1498_v7  ;;  %v2357_v28 = vpop.f32.mrb[28].mxu0 }
 0x13f   : > { %v2421_v58 = vpop.f32.mrb[28].mxu1  ;;  %v2358_v35 = vpop.f32.mrb[29].mxu0 }
 0x140   : > { %v2422_v10 = vpop.f32.mrb[29].mxu1  ;;  %v2359_v49 = vadd.f32 %v2358_v35, %v2357_v28  ;;  %v2360_v0 = vpop.f32.mrb[30].mxu0 }
 0x141   : > { %v2423_v3 = vadd.f32 %v2422_v10, %v2421_v58  ;;  %v2424_v23 = vpop.f32.mrb[30].mxu1  ;;  %v2361_v9 = vpop.f32.mrb[31].mxu0 }
 0x142   : > { %v2425_v41 = vpop.f32.mrb[31].mxu1  ;;  %v1503_v43 = vadd.f32 %v2359_v49, %v3540_v1  ;;  %v2362_v53 = vadd.f32 %v2361_v9, %v2360_v0 }
 0x143   : > { %v2426_v18 = vadd.f32 %v2425_v41, %v2424_v23 }
 0x144   : > { %v3585_v11 = vadd.f32 %v2423_v3, %v1503_v43  ;;  %v1506_v12 = vadd.f32 %v2362_v53, %v3540_v1 }
 0x146   : > { %v3588_v56 = vadd.f32 %v2426_v18, %v1506_v12  ;;  %v2443_v13 = vpop.f32.mrb[32].mxu0 }
 0x147   : > { %v2507_v25 = vpop.f32.mrb[32].mxu1  ;;  %v2444_v16 = vpop.f32.mrb[33].mxu0 }
 0x148   : > { %v2508_v14 = vpop.f32.mrb[33].mxu1  ;;  %v2445_v20 = vadd.f32 %v2444_v16, %v2443_v13  ;;  %v2446_v24 = vpop.f32.mrb[34].mxu0 }
 0x149   : > { %v2509_v26 = vadd.f32 %v2508_v14, %v2507_v25  ;;  %v2510_v29 = vpop.f32.mrb[34].mxu1  ;;  %v2447_v30 = vpop.f32.mrb[35].mxu0 }
 0x14a   : > { %v2511_v31 = vpop.f32.mrb[35].mxu1  ;;  %v1641_v32 = vadd.f32 %v2445_v20, %v3543_v55  ;;  %v2448_v22 = vadd.f32 %v2447_v30, %v2446_v24 }
 0x14b   : > { %v2512_v33 = vadd.f32 %v2511_v31, %v2510_v29 }
 0x14c   : > { %v1644_v27 = vadd.f32 %v2448_v22, %v3546_v15  ;;  %v3592_v5 = vadd.f32 %v2509_v26, %v1641_v32 }
 0x14e   : > { %v2449_v1 = vpop.f32.mrb[36].mxu0  ;;  %v3594_v38 = vadd.f32 %v2512_v33, %v1644_v27 }
 0x14f   : > { %v2513_v36 = vpop.f32.mrb[36].mxu1  ;;  %v2450_v39 = vpop.f32.mrb[37].mxu0 }
 0x150   : > { %v2514_v46 = vpop.f32.mrb[37].mxu1  ;;  %v2451_v48 = vadd.f32 %v2450_v39, %v2449_v1  ;;  %v2452_v52 = vpop.f32.mrb[38].mxu0 }
 0x151   : > { %v2515_v51 = vadd.f32 %v2514_v46, %v2513_v36  ;;  %v2516_v54 = vpop.f32.mrb[38].mxu1  ;;  %v2453_v57 = vpop.f32.mrb[39].mxu0 }
 0x152   : > { %v2517_v59 = vpop.f32.mrb[39].mxu1  ;;  %v1649_v55 = vadd.f32 %v2451_v48, %v3549_v34  ;;  %v2454_v2 = vadd.f32 %v2453_v57, %v2452_v52 }
 0x153   : > { %v2518_v60 = vadd.f32 %v2517_v59, %v2516_v54 }
 0x154   : > { %v1652_v15 = vadd.f32 %v2454_v2, %v3552_v37  ;;  %v3598_v61 = vadd.f32 %v2515_v51, %v1649_v55 }
 0x156   : > { %v2455_v63 = vpop.f32.mrb[40].mxu0  ;;  %v3600_v4 = vadd.f32 %v2518_v60, %v1652_v15 }
 0x157   : > { %v2519_v42 = vpop.f32.mrb[40].mxu1  ;;  %v2456_v40 = vpop.f32.mrb[41].mxu0 }
 0x158   : > { %v2520_v7 = vpop.f32.mrb[41].mxu1  ;;  %v2457_v28 = vadd.f32 %v2456_v40, %v2455_v63  ;;  %v2458_v35 = vpop.f32.mrb[42].mxu0 }
 0x159   : > { %v2521_v58 = vadd.f32 %v2520_v7, %v2519_v42  ;;  %v2522_v10 = vpop.f32.mrb[42].mxu1  ;;  %v2459_v49 = vpop.f32.mrb[43].mxu0 }
 0x15a   : > { %v2523_v3 = vpop.f32.mrb[43].mxu1  ;;  %v1657_v34 = vadd.f32 %v2457_v28, %v3555_v45  ;;  %v2460_v0 = vadd.f32 %v2459_v49, %v2458_v35 }
 0x15b   : > { %v2524_v23 = vadd.f32 %v2523_v3, %v2522_v10 }
 0x15c   : > { %v1660_v37 = vadd.f32 %v2460_v0, %v3558_v62  ;;  %v3604_v9 = vadd.f32 %v2521_v58, %v1657_v34 }
 0x15e   : > { %v2461_v41 = vpop.f32.mrb[44].mxu0  ;;  %v3606_v53 = vadd.f32 %v2524_v23, %v1660_v37 }
 0x15f   : > { %v2525_v43 = vpop.f32.mrb[44].mxu1  ;;  %v2462_v18 = vpop.f32.mrb[45].mxu0 }
 0x160   : > { %v2526_v12 = vpop.f32.mrb[45].mxu1  ;;  %v2463_v13 = vadd.f32 %v2462_v18, %v2461_v41  ;;  %v2464_v16 = vpop.f32.mrb[46].mxu0 }
 0x161   : > { %v2527_v25 = vadd.f32 %v2526_v12, %v2525_v43  ;;  %v2528_v14 = vpop.f32.mrb[46].mxu1  ;;  %v2465_v20 = vpop.f32.mrb[47].mxu0 }
 0x162   : > { %v2529_v26 = vpop.f32.mrb[47].mxu1  ;;  %v1665_v45 = vadd.f32 %v2463_v13, %v3561_v19  ;;  %v2466_v24 = vadd.f32 %v2465_v20, %v2464_v16 }
 0x163   : > { %v2530_v29 = vadd.f32 %v2529_v26, %v2528_v14 }
 0x164   : > { %v1668_v62 = vadd.f32 %v2466_v24, %v3564_v50  ;;  %v3610_v30 = vadd.f32 %v2527_v25, %v1665_v45 }
 0x166   : > { %v2467_v31 = vpop.f32.mrb[48].mxu0  ;;  %v3612_v22 = vadd.f32 %v2530_v29, %v1668_v62 }
 0x167   : > { %v2531_v32 = vpop.f32.mrb[48].mxu1  ;;  %v2468_v33 = vpop.f32.mrb[49].mxu0 }
 0x168   : > { %v2532_v27 = vpop.f32.mrb[49].mxu1  ;;  %v2469_v1 = vadd.f32 %v2468_v33, %v2467_v31  ;;  %v2470_v39 = vpop.f32.mrb[50].mxu0 }
 0x169   : > { %v2533_v36 = vadd.f32 %v2532_v27, %v2531_v32  ;;  %v2534_v46 = vpop.f32.mrb[50].mxu1  ;;  %v2471_v48 = vpop.f32.mrb[51].mxu0 }
 0x16a   : > { %v2535_v51 = vpop.f32.mrb[51].mxu1  ;;  %v1673_v19 = vadd.f32 %v2469_v1, %v3567_v17  ;;  %v2472_v52 = vadd.f32 %v2471_v48, %v2470_v39 }
 0x16b   : > { %v2536_v54 = vadd.f32 %v2535_v51, %v2534_v46 }
 0x16c   : > { %v1676_v50 = vadd.f32 %v2472_v52, %v3570_v21  ;;  %v1770_v57 = vadd.f32 %v2533_v36, %v1673_v19 }
 0x16e   : > { %v2473_v59 = vpop.f32.mrb[52].mxu0  ;;  %v3616_v2 = vadd.f32 %v2536_v54, %v1676_v50 }
 0x16f   : > { %v2537_v55 = vpop.f32.mrb[52].mxu1  ;;  %v2474_v60 = vpop.f32.mrb[53].mxu0 }
 0x170   : > { %v2538_v15 = vpop.f32.mrb[53].mxu1  ;;  %v2475_v63 = vadd.f32 %v2474_v60, %v2473_v59  ;;  %v2476_v40 = vpop.f32.mrb[54].mxu0 }
 0x171   : > { %v2539_v42 = vadd.f32 %v2538_v15, %v2537_v55  ;;  %v2540_v7 = vpop.f32.mrb[54].mxu1  ;;  %v2477_v28 = vpop.f32.mrb[55].mxu0 }
 0x172   : > { %v2541_v58 = vpop.f32.mrb[55].mxu1  ;;  %v1681_v35 = vadd.f32 %v2475_v63, %v3573_v44  ;;  %v2478_v17 = vadd.f32 %v2477_v28, %v2476_v40 }
 0x173   : > { %v2542_v10 = vadd.f32 %v2541_v58, %v2540_v7 }
 0x174   : > { %v1684_v49 = vadd.f32 %v2478_v17, %v3576_v47  ;;  %v1778_v21 = vadd.f32 %v2539_v42, %v1681_v35 }
 0x176   : > { %v2479_v3 = vpop.f32.mrb[56].mxu0  ;;  %v1781_v0 = vadd.f32 %v2542_v10, %v1684_v49 }
 0x177   : > { %v2543_v34 = vpop.f32.mrb[56].mxu1  ;;  %v2480_v23 = vpop.f32.mrb[57].mxu0 }
 0x178   : > { %v2544_v37 = vpop.f32.mrb[57].mxu1  ;;  %v2481_v41 = vadd.f32 %v2480_v23, %v2479_v3  ;;  %v2482_v18 = vpop.f32.mrb[58].mxu0 }
 0x179   : > { %v2545_v43 = vadd.f32 %v2544_v37, %v2543_v34  ;;  %v2546_v12 = vpop.f32.mrb[58].mxu1  ;;  %v2483_v13 = vpop.f32.mrb[59].mxu0 }
 0x17a   : > { %v2547_v25 = vpop.f32.mrb[59].mxu1  ;;  %v1689_v16 = vadd.f32 %v2481_v41, %v3579_v6  ;;  %v2484_v14 = vadd.f32 %v2483_v13, %v2482_v18 }
 0x17b   : > { %v2548_v44 = vadd.f32 %v2547_v25, %v2546_v12 }
 0x17c   : > { %v1692_v20 = vadd.f32 %v2484_v14, %v3582_v8  ;;  %v3622_v26 = vadd.f32 %v2545_v43, %v1689_v16 }
 0x17e   : > { %v2485_v47 = vpop.f32.mrb[60].mxu0  ;;  %v3624_v24 = vadd.f32 %v2548_v44, %v1692_v20 }
 0x17f   : > { %v2549_v45 = vpop.f32.mrb[60].mxu1  ;;  %v2486_v29 = vpop.f32.mrb[61].mxu0 }
 0x180   : > { %v2550_v62 = vpop.f32.mrb[61].mxu1  ;;  %v2487_v31 = vadd.f32 %v2486_v29, %v2485_v47  ;;  %v2488_v33 = vpop.f32.mrb[62].mxu0 }
 0x181   : > { %v2551_v32 = vadd.f32 %v2550_v62, %v2549_v45  ;;  %v2552_v27 = vpop.f32.mrb[62].mxu1  ;;  %v2489_v1 = vpop.f32.mrb[63].mxu0 }
 0x182   : > { %v2553_v36 = vpop.f32.mrb[63].mxu1  ;;  %v1697_v6 = vadd.f32 %v2487_v31, %v3585_v11  ;;  %v2490_v39 = vadd.f32 %v2489_v1, %v2488_v33 }
 0x183   : > { %v2554_v8 = vadd.f32 %v2553_v36, %v2552_v27 }
 0x184   : > { %v1700_v46 = vadd.f32 %v2490_v39, %v3588_v56  ;;  %v1794_v48 = vadd.f32 %v2551_v32, %v1697_v6 }
 0x186   : > { %v2589_v51 = vpop.f32.mrb[64].mxu0  ;;  %v1797_v52 = vadd.f32 %v2554_v8, %v1700_v46 }
 0x187   : > { %v2597_v19 = vpop.f32.mrb[64].mxu1  ;;  %v1843_v54 = vadd.f32 %v2589_v51, %v3598_v61  ;;  %v1834_v59 = vpop.f32.mrb[65].mxu0 }
 0x188   : > { %v1875_v50 = vadd.f32 %v2597_v19, %v1778_v21  ;;  %v1866_v55 = vpop.f32.mrb[65].mxu1  ;;  %v1835_v60 = vadd.f32 %v1834_v59, %v3592_v5  ;;  %v2590_v11 = vpop.f32.mrb[66].mxu0 }
 0x189   : > { %v1867_v15 = vadd.f32 %v1866_v55, %v1770_v57  ;;  %v2598_v63 = vpop.f32.mrb[66].mxu1  ;;  %v1846_v56 = vadd.f32 %v2590_v11, %v3600_v4  ;;  %v1837_v40 = vpop.f32.mrb[67].mxu0  ;;  %v1899_v58 = vmax.f32 %v1843_v54, 0.0 }
 0x18a   : > { %v1878_v42 = vadd.f32 %v2598_v63, %v1781_v0  ;;  %v1869_v7 = vpop.f32.mrb[67].mxu1  ;;  %v1838_v28 = vadd.f32 %v1837_v40, %v3594_v38  ;;  %v1907_v35 = vmax.f32 %v1875_v50, 0.0  ;;  %v1897_v57 = vmax.f32 %v1835_v60, 0.0 }
 0x18b   : > { %v1870_v61 = vadd.f32 %v1869_v7, %v3616_v2  ;;  %v1900_v17 = vmax.f32 %v1846_v56, 0.0  ;;  %v1905_v10 = vmax.f32 %v1867_v15, 0.0 }
 0x18c   : > { %v1908_v5 = vmax.f32 %v1878_v42, 0.0  ;;  %v1898_v49 = vmax.f32 %v1838_v28, 0.0 }
 0x18d   : > { %v1906_v21 = vmax.f32 %v1870_v61, 0.0  ;;  %v2260_v3 = vpack.c.bf16 %v1900_v17, %v1899_v58 }
 0x18e   : > { %v2280_v34 = vpack.c.bf16 %v1908_v5, %v1907_v35  ;;  %v2255_v4 = vpack.c.bf16 %v1898_v49, %v1897_v57  ;;  %v2593_v23 = vpop.f32.mrb[68].mxu0 }
 0x18f   : > { %v2275_v0 = vpack.c.bf16 %v1906_v21, %v1905_v10  ;;  %v2601_v37 = vpop.f32.mrb[68].mxu1  ;;  %2292 = vst [vmem:[%s3638_s21 + $0x8] sm:$0xff] %v2260_v3   ;;  %v1859_v38 = vadd.f32 %v2593_v23, %v3610_v30  ;;  %v1850_v41 = vpop.f32.mrb[69].mxu0 }
 0x190   : > { %2296 = vst [vmem:[%s3638_s21 + $0x28] sm:$0xff] %v2280_v34   ;;  %v1891_v2 = vadd.f32 %v2601_v37, %v1794_v48  ;;  %v1882_v43 = vpop.f32.mrb[69].mxu1  ;;  %2256 = vst [vmem:[%s3638_s21] sm:$0xff] %v2255_v4   ;;  %v1851_v18 = vadd.f32 %v1850_v41, %v3604_v9  ;;  %v2594_v13 = vpop.f32.mrb[70].mxu0 }
 0x191   : > { %2295 = vst [vmem:[%s3638_s21 + $0x20] sm:$0xff] %v2275_v0   ;;  %v1883_v12 = vadd.f32 %v1882_v43, %v3622_v26  ;;  %v2602_v25 = vpop.f32.mrb[70].mxu1  ;;  %v1862_v16 = vadd.f32 %v2594_v13, %v3612_v22  ;;  %v1853_v44 = vpop.f32.mrb[71].mxu0  ;;  %v1903_v45 = vmax.f32 %v1859_v38, 0.0 }
 0x192   : > { %v1894_v14 = vadd.f32 %v2602_v25, %v1797_v52  ;;  %v1885_v20 = vpop.f32.mrb[71].mxu1  ;;  %v1854_v30 = vadd.f32 %v1853_v44, %v3606_v53  ;;  %v1911_v9 = vmax.f32 %v1891_v2, 0.0  ;;  %v1901_v62 = vmax.f32 %v1851_v18, 0.0 }
 0x193   : > { %v1886_v47 = vadd.f32 %v1885_v20, %v3624_v24  ;;  %v1904_v26 = vmax.f32 %v1862_v16, 0.0  ;;  %v1909_v22 = vmax.f32 %v1883_v12, 0.0 }
 0x194   : > { %v1912_v29 = vmax.f32 %v1894_v14, 0.0  ;;  %v1902_v31 = vmax.f32 %v1854_v30, 0.0 }
 0x195   : > { %v1910_v32 = vmax.f32 %v1886_v47, 0.0  ;;  %v2270_v33 = vpack.c.bf16 %v1904_v26, %v1903_v45 }
 0x196   : > { %v2290_v53 = vpack.c.bf16 %v1912_v29, %v1911_v9  ;;  %v2265_v24 = vpack.c.bf16 %v1902_v31, %v1901_v62 }
 0x197   : > { %v2285_v27 = vpack.c.bf16 %v1910_v32, %v1909_v22  ;;  %2294 = vst [vmem:[%s3638_s21 + $0x18] sm:$0xff] %v2270_v33  }
 0x198   : > { %2298 = vst [vmem:[%s3638_s21 + $0x38] sm:$0xff] %v2290_v53   ;;  %2293 = vst [vmem:[%s3638_s21 + $0x10] sm:$0xff] %v2265_v24  }
 0x199   : > { %2297 = vst [vmem:[%s3638_s21 + $0x30] sm:$0xff] %v2285_v27  }
 0x19a   : > { %2788 = shalt.err (!%p2785_p6)
}
 0x19b   : > { %s2789_s8 = scalar_lea.hbm %s3654_s5, 1024  ;;  %s2793_s20 = scalar_lea.hbm %s3719_s3, 4096 }
 0x19c   : > { %p2790_p7 = scmp.ne.s32.totalorder %s3654_s5, %s2789_s8  ;;  %p2794_p11 = scmp.lt.u32.totalorder %s3654_s5, %s3719_s3 }
 0x19d   : > { %p2795_p12 = scmp.lt.u32.totalorder %s2793_s20, %s2789_s8  ;;  %p2797_p0 = scmp.lt.u32.totalorder %s2789_s8, %s3654_s5 }
 0x19e   : > { %p2791_p9 = pnand %p2790_p7, %p2945_p3 }
 0x19f   : > { %p2796_p13 = por %p2795_p12, %p2794_p11 }
 0x1a0   : > { %p2792_p10 = pneg %p2791_p9 }
 0x1a1   : > { %p2798_p1 = por %p2797_p0, %p2796_p13 }
 0x1a3   : > { %p2799_p2 = pnand %p2798_p1, %p2792_p10 }
 0x1a5   : > { %2802 = shalt.err (!%p2799_p2)
}
 0x1a6   : > { %s2872_s16 = smov 64   ;;  %s2873_s9 = smov 4  }
 0x1a7   : > { %2620 = dma.vmem_to_hbm [thread:$0]  (%p2945_p3), %s3656_s27, 1024, %s3654_s5, %s3664_s24, %s2872_s16, %s2872_s16, %s2873_s9  }
 0x1a8 PF: > { %p2626_p4 = scmp.ge.s32.totalorder %s2869_s19, 2  ;;  %s2025_s4 = sand.u32 1, %s2841_s12  }
 0x1a9   : > { %s2026_s29 = scalar_lea.sflag [#allocation4], %s2025_s4 }
 0x1aa   : > { %p2623_p5 = pnand %p2626_p4, %p2954_p8 }
 0x1ac   : > { %2836 = dma.done.wait (!%p2623_p5), %s2026_s29, 1024  }
 0x1ad   : > { %2838 = vsyncadd (!%p2623_p5), %s2026_s29, 4294966272  ;;  %s16_s19 = sadd.s32 1, %s2869_s19   ;;  %s3726_s12 = smov %s2845_s13 }
 0x1ae   : > { %p13_p6 = scmp.ge.s32.totalorder %s16_s19, 6   ;;  %s3727_s13 = smov %s2849_s14 }
 0x1af   : > { %s3728_s14 = smov %s2963_s30  ;;  %s3729_s15 = smov %s2861_s17 }
 0x1b0   : > { %s3730_s16 = smov %s2865_s18  ;;  %s3731_s17 = smov %s3734_s22 }
 0x1b1   : > { %s3732_s18 = smov %s3738_s23  ;;  %15 = sbr.rel (!%p13_p6) target bundleno = 5 (0x5), region = 68 }
 0x1b8   :  { %2031 = vsyncpa [#allocation4], 1 }
 0x1b9   :  { %2033 = vsyncpa [#allocation4 + $0x1], 1 }

</bundles_post_ra>
